<compile_context>
chip_gen: v7x
topology: tpu7x:2x2x1
jax: 0.10.0
libtpu: 0.0.40
codegen_flags: <defaults>
</compile_context>

<pallas_src>
import jax
import jax.numpy as jnp
from jax import lax
from jax.experimental import pallas as pl
from jax.experimental.pallas import tpu as pltpu


def attblock_kernel(x2_ref, h0_ref, c0_ref, wx_ref, wf_ref, bf_ref, out_ref):
    T, B, H = out_ref.shape
    G = 4 * H                         # LSTM gate width
    BL, I = x2_ref.shape
    L = BL // B                       # len_seq

    # ---- One-time (loop-invariant) work, off the serial critical path ----
    # P_k[b, l, :] = x[b, l, :] @ W_ih_k.T   (k = 0..2), kept in bf16 for the MXU.
    p_big = jnp.dot(x2_ref[...], wx_ref[...],
                    preferred_element_type=jnp.float32)          # (B*L, 3G) f32
    p_heads = [
        p_big[:, k * G:(k + 1) * G].reshape(B, L, G).astype(jnp.bfloat16)
        for k in range(3)
    ]
    wf = wf_ref[...]                                             # (H, G+3L) bf16
    bf_b = jnp.broadcast_to(bf_ref[...], (B, G + 3 * L))         # hoisted broadcast

    def step(t, carry):
        h, c = carry                                             # f32 (B, H)

        # Single MXU matmul per step: gate h-term + all 3 attention logit blocks.
        hw = jnp.dot(h.astype(jnp.bfloat16), wf,
                     preferred_element_type=jnp.float32) + bf_b  # (B, G+3L)

        gates = hw[:, :G]                                        # h@W_hh.T + b_ih + b_hh
        for k in range(3):
            s = hw[:, G + k * L: G + (k + 1) * L]                # (B, L) logits
            s = s - jnp.max(s, axis=1, keepdims=True)
            e = jnp.exp(s)
            soft = e / jnp.sum(e, axis=1, keepdims=True)         # exact reciprocal
            # v_k @ W_ih_k.T  ==  softmax_k @ P_k : (B,1,L) @ (B,L,G) -> (B,1,G)
            gk = jnp.einsum('bml,blg->bmg',
                            soft.astype(jnp.bfloat16)[:, None, :], p_heads[k],
                            preferred_element_type=jnp.float32)
            gates = gates + gk[:, 0, :]

        # nn.LSTMCell gate order [i, f, g, o]; element-wise math stays f32.
        i_g = jax.nn.sigmoid(gates[:, 0 * H:1 * H])
        f_g = jax.nn.sigmoid(gates[:, 1 * H:2 * H])
        g_g = jnp.tanh(gates[:, 2 * H:3 * H])
        o_g = jax.nn.sigmoid(gates[:, 3 * H:4 * H])

        c_new = f_g * c + i_g * g_g
        h_new = o_g * jnp.tanh(c_new)

        out_ref[t] = h_new                                       # (B, H) slab at step t
        return (h_new, c_new)

    # T=5: full unroll keeps the whole recurrence visible to the LLO scheduler.
    lax.fori_loop(0, T, step, (h0_ref[...], c0_ref[...]), unroll=True)


def attblock_forward(x, h0, c0, params, output_size):
    B, L, I = x.shape
    H = h0.shape[1]
    G = 4 * H
    w1, b1, w2, b2, w3, b3, wih, bih, whh, bhh = params

    # One-time host-side weight prep: pre-transpose + fuse; MXU weight operands
    # in bf16, biases stay f32.  Layout of the fused h-matmul: [gates | scores].
    wf = jnp.concatenate([whh.T, w1.T, w2.T, w3.T], axis=1).astype(jnp.bfloat16)   # (H, G+3L)
    bf = jnp.concatenate([bih + bhh, b1, b2, b3], axis=1).astype(jnp.float32)      # (1, G+3L)
    wx = jnp.concatenate([wih[:, 0 * I:1 * I].T,
                          wih[:, 1 * I:2 * I].T,
                          wih[:, 2 * I:3 * I].T], axis=1).astype(jnp.bfloat16)     # (I, 3G)
    x2 = x.reshape(B * L, I).astype(jnp.bfloat16)                                  # (B*L, I)

    full = lambda shape: pl.BlockSpec(shape, lambda i: (0,) * len(shape))

    out_tbh = pl.pallas_call(
        attblock_kernel,
        out_shape=jax.ShapeDtypeStruct((output_size, B, H), jnp.float32),
        grid_spec=pltpu.PrefetchScalarGridSpec(
            num_scalar_prefetch=0,
            grid=(1,),                                  # single invocation, fully VMEM-resident
            in_specs=[
                full((B * L, I)),                       # x, flattened to (B*L, I)
                full((B, H)),                           # h0
                full((B, H)),                           # c0
                full((I, 3 * G)),                       # fused [W_ih_1.T|W_ih_2.T|W_ih_3.T]
                full((H, G + 3 * L)),                   # fused [W_hh.T|densa1.T|densa2.T|densa3.T]
                full((1, G + 3 * L)),                   # fused [b_ih+b_hh|b1|b2|b3]
            ],
            out_specs=full((output_size, B, H)),
        ),
        compiler_params=pltpu.CompilerParams(
            dimension_semantics=("arbitrary",),
        ),
    )(x2, h0, c0, wx, wf, bf)

    # (T, B, H) -> (B, T, H) to match torch.cat(out, dim=1).
    return jnp.transpose(out_tbh, (1, 0, 2))


def attblock_reference(x, h0, c0, params, output_size):
    """Pure-JAX f32 reference mirroring the PyTorch forward (mati=False, dropout=0)."""
    w1, b1, w2, b2, w3, b3, wih, bih, whh, bhh = params
    h, c = h0, c0
    H = h.shape[1]
    outs = []
    for _ in range(output_size):
        def attend(w, b):
            alp = h @ w.T + b[0]
            soft = jax.nn.softmax(alp, axis=1)
            return jnp.sum(x * soft[:, :, None], axis=1)
        v = jnp.concatenate([attend(w1, b1), attend(w2, b2), attend(w3, b3)], axis=-1)
        gates = v @ wih.T + bih[0] + h @ whh.T + bhh[0]
        i_g = jax.nn.sigmoid(gates[:, 0 * H:1 * H])
        f_g = jax.nn.sigmoid(gates[:, 1 * H:2 * H])
        g_g = jnp.tanh(gates[:, 2 * H:3 * H])
        o_g = jax.nn.sigmoid(gates[:, 3 * H:4 * H])
        c = f_g * c + i_g * g_g
        h = o_g * jnp.tanh(c)
        outs.append(h[:, None, :])
    return jnp.concatenate(outs, axis=1)


if __name__ == "__main__":
    # x: (batch, len_seq, input_size); hc: ((batch, hidden), (batch, hidden))
    batch, len_seq, input_size, hidden_size, output_size = 2, 8, 4, 32, 5

    key = jax.random.PRNGKey(0)
    keys = jax.random.split(key, 13)

    x = jax.random.normal(keys[0], (batch, len_seq, input_size), dtype=jnp.float32)
    h0 = 0.1 * jax.random.normal(keys[11], (batch, hidden_size), dtype=jnp.float32)
    c0 = 0.1 * jax.random.normal(keys[12], (batch, hidden_size), dtype=jnp.float32)

    def uni(k, shape, scale=0.2):
        return jax.random.uniform(k, shape, jnp.float32, -scale, scale)

    params = (
        uni(keys[1], (len_seq, hidden_size)),             # densa1.weight
        uni(keys[2], (1, len_seq)),                       # densa1.bias
        uni(keys[3], (len_seq, hidden_size)),             # densa2.weight
        uni(keys[4], (1, len_seq)),                       # densa2.bias
        uni(keys[5], (len_seq, hidden_size)),             # densa3.weight
        uni(keys[6], (1, len_seq)),                       # densa3.bias
        uni(keys[7], (4 * hidden_size, 3 * input_size)),  # lstm W_ih
        uni(keys[8], (1, 4 * hidden_size)),               # lstm b_ih
        uni(keys[9], (4 * hidden_size, hidden_size)),     # lstm W_hh
        uni(keys[10], (1, 4 * hidden_size)),              # lstm b_hh
    )

    out = attblock_forward(x, h0, c0, params, output_size)
    out = jax.block_until_ready(out)

    ref = attblock_reference(x, h0, c0, params, output_size)
    assert out.shape == (batch, output_size, hidden_size)
    # Tolerance accounts for bf16 MXU operands (accumulation in f32) drifting
    # through the 5-step LSTM recurrence; the reference is pure f32.
    assert jnp.allclose(out, ref, atol=5e-2, rtol=5e-2), "mismatch vs pure-JAX reference"

    print("KERNEL_OK")
</pallas_src>

<mosaic_0001>
module attributes {stable_mosaic.version = 11 : i64} {
  func.func @attblock_kernel(%arg0: i32, %arg1: memref<16x4xbf16, #tpu.memory_space<vmem>>, %arg2: memref<2x32xf32, #tpu.memory_space<vmem>>, %arg3: memref<2x32xf32, #tpu.memory_space<vmem>>, %arg4: memref<4x384xbf16, #tpu.memory_space<vmem>>, %arg5: memref<32x152xbf16, #tpu.memory_space<vmem>>, %arg6: memref<1x152xf32, #tpu.memory_space<vmem>>, %arg7: memref<5x2x32xf32, #tpu.memory_space<vmem>>) attributes {dimension_semantics = [#tpu.dimension_semantics<arbitrary>], iteration_bounds = array<i64: 1>, scalar_prefetch = 0 : i64, scratch_operands = 0 : i64, tpu.core_type = #tpu.core_type<tc>, window_params = [{pipeline_mode = #tpu.pipeline_mode<synchronous>, transform_indices = @transform_0, window_bounds = array<i64: 16, 4>}, {pipeline_mode = #tpu.pipeline_mode<synchronous>, transform_indices = @transform_1, window_bounds = array<i64: 2, 32>}, {pipeline_mode = #tpu.pipeline_mode<synchronous>, transform_indices = @transform_2, window_bounds = array<i64: 2, 32>}, {pipeline_mode = #tpu.pipeline_mode<synchronous>, transform_indices = @transform_3, window_bounds = array<i64: 4, 384>}, {pipeline_mode = #tpu.pipeline_mode<synchronous>, transform_indices = @transform_4, window_bounds = array<i64: 32, 152>}, {pipeline_mode = #tpu.pipeline_mode<synchronous>, transform_indices = @transform_5, window_bounds = array<i64: 1, 152>}, {pipeline_mode = #tpu.pipeline_mode<synchronous>, transform_indices = @transform_6, window_bounds = array<i64: 5, 2, 32>}]} {
    %c0 = arith.constant 0 : index
    %c0_0 = arith.constant 0 : index
    %0 = vector.load %arg1[%c0, %c0_0] : memref<16x4xbf16, #tpu.memory_space<vmem>>, vector<16x4xbf16>
    %c0_1 = arith.constant 0 : index
    %c0_2 = arith.constant 0 : index
    %1 = vector.load %arg4[%c0_1, %c0_2] : memref<4x384xbf16, #tpu.memory_space<vmem>>, vector<4x384xbf16>
    %cst = arith.constant dense<0.000000e+00> : vector<16x384xf32>
    %2 = tpu.matmul %0, %1, %cst {dimension_numbers = #tpu.dot_dimension_numbers<[1], [0], [0], [1], [0, 0, 1, 1], [], []>} : vector<16x4xbf16>, vector<4x384xbf16>, vector<16x384xf32> -> vector<16x384xf32>
    %3 = vector.extract_strided_slice %2 {offsets = [0, 0], sizes = [16, 128], strides = [1, 1]} : vector<16x384xf32> to vector<16x128xf32>
    %4 = vector.shape_cast %3 : vector<16x128xf32> to vector<2x8x128xf32>
    %5 = arith.truncf %4 : vector<2x8x128xf32> to vector<2x8x128xbf16>
    %6 = vector.extract_strided_slice %2 {offsets = [0, 128], sizes = [16, 128], strides = [1, 1]} : vector<16x384xf32> to vector<16x128xf32>
    %7 = vector.shape_cast %6 : vector<16x128xf32> to vector<2x8x128xf32>
    %8 = arith.truncf %7 : vector<2x8x128xf32> to vector<2x8x128xbf16>
    %9 = vector.extract_strided_slice %2 {offsets = [0, 256], sizes = [16, 128], strides = [1, 1]} : vector<16x384xf32> to vector<16x128xf32>
    %10 = vector.shape_cast %9 : vector<16x128xf32> to vector<2x8x128xf32>
    %11 = arith.truncf %10 : vector<2x8x128xf32> to vector<2x8x128xbf16>
    %c0_3 = arith.constant 0 : index
    %c0_4 = arith.constant 0 : index
    %12 = vector.load %arg5[%c0_3, %c0_4] : memref<32x152xbf16, #tpu.memory_space<vmem>>, vector<32x152xbf16>
    %c0_5 = arith.constant 0 : index
    %c0_6 = arith.constant 0 : index
    %13 = vector.load %arg6[%c0_5, %c0_6] : memref<1x152xf32, #tpu.memory_space<vmem>>, vector<1x152xf32>
    %14 = vector.shape_cast %13 : vector<1x152xf32> to vector<1x152xf32>
    %15 = vector.broadcast %14 : vector<1x152xf32> to vector<2x152xf32>
    %c0_7 = arith.constant 0 : index
    %c0_8 = arith.constant 0 : index
    %16 = vector.load %arg2[%c0_7, %c0_8] : memref<2x32xf32, #tpu.memory_space<vmem>>, vector<2x32xf32>
    %c0_9 = arith.constant 0 : index
    %c0_10 = arith.constant 0 : index
    %17 = vector.load %arg3[%c0_9, %c0_10] : memref<2x32xf32, #tpu.memory_space<vmem>>, vector<2x32xf32>
    %c0_i32 = arith.constant 0 : i32
    %18 = arith.truncf %16 : vector<2x32xf32> to vector<2x32xbf16>
    %cst_11 = arith.constant dense<0.000000e+00> : vector<2x152xf32>
    %19 = tpu.matmul %18, %12, %cst_11 {dimension_numbers = #tpu.dot_dimension_numbers<[1], [0], [0], [1], [0, 0, 1, 1], [], []>} : vector<2x32xbf16>, vector<32x152xbf16>, vector<2x152xf32> -> vector<2x152xf32>
    %20 = arith.addf %19, %15 : vector<2x152xf32>
    %21 = vector.extract_strided_slice %20 {offsets = [0, 0], sizes = [2, 128], strides = [1, 1]} : vector<2x152xf32> to vector<2x128xf32>
    %22 = vector.extract_strided_slice %20 {offsets = [0, 128], sizes = [2, 8], strides = [1, 1]} : vector<2x152xf32> to vector<2x8xf32>
    %cst_12 = arith.constant dense<0xFF800000> : vector<2xf32>
    %23 = vector.multi_reduction <maximumf>, %22, %cst_12 [1] : vector<2x8xf32> to vector<2xf32>
    %24 = vector.shape_cast %23 : vector<2xf32> to vector<2x1xf32>
    %25 = vector.broadcast %24 : vector<2x1xf32> to vector<2x8xf32>
    %26 = arith.subf %22, %25 : vector<2x8xf32>
    %27 = math.exp %26 : vector<2x8xf32>
    %cst_13 = arith.constant dense<0.000000e+00> : vector<2xf32>
    %28 = vector.multi_reduction <add>, %27, %cst_13 [1] : vector<2x8xf32> to vector<2xf32>
    %29 = vector.shape_cast %28 : vector<2xf32> to vector<2x1xf32>
    %30 = vector.broadcast %29 : vector<2x1xf32> to vector<2x8xf32>
    %31 = arith.divf %27, %30 : vector<2x8xf32>
    %32 = arith.truncf %31 : vector<2x8xf32> to vector<2x8xbf16>
    %33 = vector.shape_cast %32 : vector<2x8xbf16> to vector<2x1x8xbf16>
    "tpu.trace_start"() <{level = 10 : i32, message = "bml,blg->bmg"}> : () -> ()
    %cst_14 = arith.constant dense<0.000000e+00> : vector<2x1x128xf32>
    %34 = tpu.matmul %33, %5, %cst_14 {dimension_numbers = #tpu.dot_dimension_numbers<[2], [1], [1], [2], [0, 0, 0, 1, 1, 2], [0], [0]>} : vector<2x1x8xbf16>, vector<2x8x128xbf16>, vector<2x1x128xf32> -> vector<2x1x128xf32>
    "tpu.trace_stop"() : () -> ()
    %35 = vector.shape_cast %34 : vector<2x1x128xf32> to vector<2x128xf32>
    %36 = arith.addf %21, %35 : vector<2x128xf32>
    %37 = vector.extract_strided_slice %20 {offsets = [0, 136], sizes = [2, 8], strides = [1, 1]} : vector<2x152xf32> to vector<2x8xf32>
    %cst_15 = arith.constant dense<0xFF800000> : vector<2xf32>
    %38 = vector.multi_reduction <maximumf>, %37, %cst_15 [1] : vector<2x8xf32> to vector<2xf32>
    %39 = vector.shape_cast %38 : vector<2xf32> to vector<2x1xf32>
    %40 = vector.broadcast %39 : vector<2x1xf32> to vector<2x8xf32>
    %41 = arith.subf %37, %40 : vector<2x8xf32>
    %42 = math.exp %41 : vector<2x8xf32>
    %cst_16 = arith.constant dense<0.000000e+00> : vector<2xf32>
    %43 = vector.multi_reduction <add>, %42, %cst_16 [1] : vector<2x8xf32> to vector<2xf32>
    %44 = vector.shape_cast %43 : vector<2xf32> to vector<2x1xf32>
    %45 = vector.broadcast %44 : vector<2x1xf32> to vector<2x8xf32>
    %46 = arith.divf %42, %45 : vector<2x8xf32>
    %47 = arith.truncf %46 : vector<2x8xf32> to vector<2x8xbf16>
    %48 = vector.shape_cast %47 : vector<2x8xbf16> to vector<2x1x8xbf16>
    "tpu.trace_start"() <{level = 10 : i32, message = "bml,blg->bmg"}> : () -> ()
    %cst_17 = arith.constant dense<0.000000e+00> : vector<2x1x128xf32>
    %49 = tpu.matmul %48, %8, %cst_17 {dimension_numbers = #tpu.dot_dimension_numbers<[2], [1], [1], [2], [0, 0, 0, 1, 1, 2], [0], [0]>} : vector<2x1x8xbf16>, vector<2x8x128xbf16>, vector<2x1x128xf32> -> vector<2x1x128xf32>
    "tpu.trace_stop"() : () -> ()
    %50 = vector.shape_cast %49 : vector<2x1x128xf32> to vector<2x128xf32>
    %51 = arith.addf %36, %50 : vector<2x128xf32>
    %52 = vector.extract_strided_slice %20 {offsets = [0, 144], sizes = [2, 8], strides = [1, 1]} : vector<2x152xf32> to vector<2x8xf32>
    %cst_18 = arith.constant dense<0xFF800000> : vector<2xf32>
    %53 = vector.multi_reduction <maximumf>, %52, %cst_18 [1] : vector<2x8xf32> to vector<2xf32>
    %54 = vector.shape_cast %53 : vector<2xf32> to vector<2x1xf32>
    %55 = vector.broadcast %54 : vector<2x1xf32> to vector<2x8xf32>
    %56 = arith.subf %52, %55 : vector<2x8xf32>
    %57 = math.exp %56 : vector<2x8xf32>
    %cst_19 = arith.constant dense<0.000000e+00> : vector<2xf32>
    %58 = vector.multi_reduction <add>, %57, %cst_19 [1] : vector<2x8xf32> to vector<2xf32>
    %59 = vector.shape_cast %58 : vector<2xf32> to vector<2x1xf32>
    %60 = vector.broadcast %59 : vector<2x1xf32> to vector<2x8xf32>
    %61 = arith.divf %57, %60 : vector<2x8xf32>
    %62 = arith.truncf %61 : vector<2x8xf32> to vector<2x8xbf16>
    %63 = vector.shape_cast %62 : vector<2x8xbf16> to vector<2x1x8xbf16>
    "tpu.trace_start"() <{level = 10 : i32, message = "bml,blg->bmg"}> : () -> ()
    %cst_20 = arith.constant dense<0.000000e+00> : vector<2x1x128xf32>
    %64 = tpu.matmul %63, %11, %cst_20 {dimension_numbers = #tpu.dot_dimension_numbers<[2], [1], [1], [2], [0, 0, 0, 1, 1, 2], [0], [0]>} : vector<2x1x8xbf16>, vector<2x8x128xbf16>, vector<2x1x128xf32> -> vector<2x1x128xf32>
    "tpu.trace_stop"() : () -> ()
    %65 = vector.shape_cast %64 : vector<2x1x128xf32> to vector<2x128xf32>
    %66 = arith.addf %51, %65 : vector<2x128xf32>
    %67 = vector.extract_strided_slice %66 {offsets = [0, 0], sizes = [2, 32], strides = [1, 1]} : vector<2x128xf32> to vector<2x32xf32>
    %68 = arith.negf %67 : vector<2x32xf32>
    %69 = math.exp %68 : vector<2x32xf32>
    %cst_21 = arith.constant 1.000000e+00 : f32
    %70 = vector.broadcast %cst_21 : f32 to vector<2x32xf32>
    %71 = arith.addf %70, %69 : vector<2x32xf32>
    %72 = arith.divf %70, %71 : vector<2x32xf32>
    %73 = vector.extract_strided_slice %66 {offsets = [0, 32], sizes = [2, 32], strides = [1, 1]} : vector<2x128xf32> to vector<2x32xf32>
    %74 = arith.negf %73 : vector<2x32xf32>
    %75 = math.exp %74 : vector<2x32xf32>
    %cst_22 = arith.constant 1.000000e+00 : f32
    %76 = vector.broadcast %cst_22 : f32 to vector<2x32xf32>
    %77 = arith.addf %76, %75 : vector<2x32xf32>
    %78 = arith.divf %76, %77 : vector<2x32xf32>
    %79 = vector.extract_strided_slice %66 {offsets = [0, 64], sizes = [2, 32], strides = [1, 1]} : vector<2x128xf32> to vector<2x32xf32>
    %80 = math.tanh %79 : vector<2x32xf32>
    %81 = vector.extract_strided_slice %66 {offsets = [0, 96], sizes = [2, 32], strides = [1, 1]} : vector<2x128xf32> to vector<2x32xf32>
    %82 = arith.negf %81 : vector<2x32xf32>
    %83 = math.exp %82 : vector<2x32xf32>
    %cst_23 = arith.constant 1.000000e+00 : f32
    %84 = vector.broadcast %cst_23 : f32 to vector<2x32xf32>
    %85 = arith.addf %84, %83 : vector<2x32xf32>
    %86 = arith.divf %84, %85 : vector<2x32xf32>
    %87 = arith.mulf %78, %17 : vector<2x32xf32>
    %88 = arith.mulf %72, %80 : vector<2x32xf32>
    %89 = arith.addf %87, %88 : vector<2x32xf32>
    %90 = math.tanh %89 : vector<2x32xf32>
    %91 = arith.mulf %86, %90 : vector<2x32xf32>
    %92 = arith.index_cast %c0_i32 : i32 to index
    %c0_24 = arith.constant 0 : index
    %c0_25 = arith.constant 0 : index
    %93 = vector.load %arg7[%92, %c0_24, %c0_25] : memref<5x2x32xf32, #tpu.memory_space<vmem>>, vector<1x2x32xf32>
    %94 = vector.shape_cast %93 : vector<1x2x32xf32> to vector<2x32xf32>
    %95 = vector.shape_cast %91 : vector<2x32xf32> to vector<1x2x32xf32>
    tpu.vector_store %arg7[%92, %c0_24, %c0_25], %95 {strides = array<i32>} : memref<5x2x32xf32, #tpu.memory_space<vmem>>, vector<1x2x32xf32>,
    %c1_i32 = arith.constant 1 : i32
    %96 = arith.truncf %91 : vector<2x32xf32> to vector<2x32xbf16>
    %cst_26 = arith.constant dense<0.000000e+00> : vector<2x152xf32>
    %97 = tpu.matmul %96, %12, %cst_26 {dimension_numbers = #tpu.dot_dimension_numbers<[1], [0], [0], [1], [0, 0, 1, 1], [], []>} : vector<2x32xbf16>, vector<32x152xbf16>, vector<2x152xf32> -> vector<2x152xf32>
    %98 = arith.addf %97, %15 : vector<2x152xf32>
    %99 = vector.extract_strided_slice %98 {offsets = [0, 0], sizes = [2, 128], strides = [1, 1]} : vector<2x152xf32> to vector<2x128xf32>
    %100 = vector.extract_strided_slice %98 {offsets = [0, 128], sizes = [2, 8], strides = [1, 1]} : vector<2x152xf32> to vector<2x8xf32>
    %cst_27 = arith.constant dense<0xFF800000> : vector<2xf32>
    %101 = vector.multi_reduction <maximumf>, %100, %cst_27 [1] : vector<2x8xf32> to vector<2xf32>
    %102 = vector.shape_cast %101 : vector<2xf32> to vector<2x1xf32>
    %103 = vector.broadcast %102 : vector<2x1xf32> to vector<2x8xf32>
    %104 = arith.subf %100, %103 : vector<2x8xf32>
    %105 = math.exp %104 : vector<2x8xf32>
    %cst_28 = arith.constant dense<0.000000e+00> : vector<2xf32>
    %106 = vector.multi_reduction <add>, %105, %cst_28 [1] : vector<2x8xf32> to vector<2xf32>
    %107 = vector.shape_cast %106 : vector<2xf32> to vector<2x1xf32>
    %108 = vector.broadcast %107 : vector<2x1xf32> to vector<2x8xf32>
    %109 = arith.divf %105, %108 : vector<2x8xf32>
    %110 = arith.truncf %109 : vector<2x8xf32> to vector<2x8xbf16>
    %111 = vector.shape_cast %110 : vector<2x8xbf16> to vector<2x1x8xbf16>
    "tpu.trace_start"() <{level = 10 : i32, message = "bml,blg->bmg"}> : () -> ()
    %cst_29 = arith.constant dense<0.000000e+00> : vector<2x1x128xf32>
    %112 = tpu.matmul %111, %5, %cst_29 {dimension_numbers = #tpu.dot_dimension_numbers<[2], [1], [1], [2], [0, 0, 0, 1, 1, 2], [0], [0]>} : vector<2x1x8xbf16>, vector<2x8x128xbf16>, vector<2x1x128xf32> -> vector<2x1x128xf32>
    "tpu.trace_stop"() : () -> ()
    %113 = vector.shape_cast %112 : vector<2x1x128xf32> to vector<2x128xf32>
    %114 = arith.addf %99, %113 : vector<2x128xf32>
    %115 = vector.extract_strided_slice %98 {offsets = [0, 136], sizes = [2, 8], strides = [1, 1]} : vector<2x152xf32> to vector<2x8xf32>
    %cst_30 = arith.constant dense<0xFF800000> : vector<2xf32>
    %116 = vector.multi_reduction <maximumf>, %115, %cst_30 [1] : vector<2x8xf32> to vector<2xf32>
    %117 = vector.shape_cast %116 : vector<2xf32> to vector<2x1xf32>
    %118 = vector.broadcast %117 : vector<2x1xf32> to vector<2x8xf32>
    %119 = arith.subf %115, %118 : vector<2x8xf32>
    %120 = math.exp %119 : vector<2x8xf32>
    %cst_31 = arith.constant dense<0.000000e+00> : vector<2xf32>
    %121 = vector.multi_reduction <add>, %120, %cst_31 [1] : vector<2x8xf32> to vector<2xf32>
    %122 = vector.shape_cast %121 : vector<2xf32> to vector<2x1xf32>
    %123 = vector.broadcast %122 : vector<2x1xf32> to vector<2x8xf32>
    %124 = arith.divf %120, %123 : vector<2x8xf32>
    %125 = arith.truncf %124 : vector<2x8xf32> to vector<2x8xbf16>
    %126 = vector.shape_cast %125 : vector<2x8xbf16> to vector<2x1x8xbf16>
    "tpu.trace_start"() <{level = 10 : i32, message = "bml,blg->bmg"}> : () -> ()
    %cst_32 = arith.constant dense<0.000000e+00> : vector<2x1x128xf32>
    %127 = tpu.matmul %126, %8, %cst_32 {dimension_numbers = #tpu.dot_dimension_numbers<[2], [1], [1], [2], [0, 0, 0, 1, 1, 2], [0], [0]>} : vector<2x1x8xbf16>, vector<2x8x128xbf16>, vector<2x1x128xf32> -> vector<2x1x128xf32>
    "tpu.trace_stop"() : () -> ()
    %128 = vector.shape_cast %127 : vector<2x1x128xf32> to vector<2x128xf32>
    %129 = arith.addf %114, %128 : vector<2x128xf32>
    %130 = vector.extract_strided_slice %98 {offsets = [0, 144], sizes = [2, 8], strides = [1, 1]} : vector<2x152xf32> to vector<2x8xf32>
    %cst_33 = arith.constant dense<0xFF800000> : vector<2xf32>
    %131 = vector.multi_reduction <maximumf>, %130, %cst_33 [1] : vector<2x8xf32> to vector<2xf32>
    %132 = vector.shape_cast %131 : vector<2xf32> to vector<2x1xf32>
    %133 = vector.broadcast %132 : vector<2x1xf32> to vector<2x8xf32>
    %134 = arith.subf %130, %133 : vector<2x8xf32>
    %135 = math.exp %134 : vector<2x8xf32>
    %cst_34 = arith.constant dense<0.000000e+00> : vector<2xf32>
    %136 = vector.multi_reduction <add>, %135, %cst_34 [1] : vector<2x8xf32> to vector<2xf32>
    %137 = vector.shape_cast %136 : vector<2xf32> to vector<2x1xf32>
    %138 = vector.broadcast %137 : vector<2x1xf32> to vector<2x8xf32>
    %139 = arith.divf %135, %138 : vector<2x8xf32>
    %140 = arith.truncf %139 : vector<2x8xf32> to vector<2x8xbf16>
    %141 = vector.shape_cast %140 : vector<2x8xbf16> to vector<2x1x8xbf16>
    "tpu.trace_start"() <{level = 10 : i32, message = "bml,blg->bmg"}> : () -> ()
    %cst_35 = arith.constant dense<0.000000e+00> : vector<2x1x128xf32>
    %142 = tpu.matmul %141, %11, %cst_35 {dimension_numbers = #tpu.dot_dimension_numbers<[2], [1], [1], [2], [0, 0, 0, 1, 1, 2], [0], [0]>} : vector<2x1x8xbf16>, vector<2x8x128xbf16>, vector<2x1x128xf32> -> vector<2x1x128xf32>
    "tpu.trace_stop"() : () -> ()
    %143 = vector.shape_cast %142 : vector<2x1x128xf32> to vector<2x128xf32>
    %144 = arith.addf %129, %143 : vector<2x128xf32>
    %145 = vector.extract_strided_slice %144 {offsets = [0, 0], sizes = [2, 32], strides = [1, 1]} : vector<2x128xf32> to vector<2x32xf32>
    %146 = arith.negf %145 : vector<2x32xf32>
    %147 = math.exp %146 : vector<2x32xf32>
    %cst_36 = arith.constant 1.000000e+00 : f32
    %148 = vector.broadcast %cst_36 : f32 to vector<2x32xf32>
    %149 = arith.addf %148, %147 : vector<2x32xf32>
    %150 = arith.divf %148, %149 : vector<2x32xf32>
    %151 = vector.extract_strided_slice %144 {offsets = [0, 32], sizes = [2, 32], strides = [1, 1]} : vector<2x128xf32> to vector<2x32xf32>
    %152 = arith.negf %151 : vector<2x32xf32>
    %153 = math.exp %152 : vector<2x32xf32>
    %cst_37 = arith.constant 1.000000e+00 : f32
    %154 = vector.broadcast %cst_37 : f32 to vector<2x32xf32>
    %155 = arith.addf %154, %153 : vector<2x32xf32>
    %156 = arith.divf %154, %155 : vector<2x32xf32>
    %157 = vector.extract_strided_slice %144 {offsets = [0, 64], sizes = [2, 32], strides = [1, 1]} : vector<2x128xf32> to vector<2x32xf32>
    %158 = math.tanh %157 : vector<2x32xf32>
    %159 = vector.extract_strided_slice %144 {offsets = [0, 96], sizes = [2, 32], strides = [1, 1]} : vector<2x128xf32> to vector<2x32xf32>
    %160 = arith.negf %159 : vector<2x32xf32>
    %161 = math.exp %160 : vector<2x32xf32>
    %cst_38 = arith.constant 1.000000e+00 : f32
    %162 = vector.broadcast %cst_38 : f32 to vector<2x32xf32>
    %163 = arith.addf %162, %161 : vector<2x32xf32>
    %164 = arith.divf %162, %163 : vector<2x32xf32>
    %165 = arith.mulf %156, %89 : vector<2x32xf32>
    %166 = arith.mulf %150, %158 : vector<2x32xf32>
    %167 = arith.addf %165, %166 : vector<2x32xf32>
    %168 = math.tanh %167 : vector<2x32xf32>
    %169 = arith.mulf %164, %168 : vector<2x32xf32>
    %170 = arith.index_cast %c1_i32 : i32 to index
    %c0_39 = arith.constant 0 : index
    %c0_40 = arith.constant 0 : index
    %171 = vector.load %arg7[%170, %c0_39, %c0_40] : memref<5x2x32xf32, #tpu.memory_space<vmem>>, vector<1x2x32xf32>
    %172 = vector.shape_cast %171 : vector<1x2x32xf32> to vector<2x32xf32>
    %173 = vector.shape_cast %169 : vector<2x32xf32> to vector<1x2x32xf32>
    tpu.vector_store %arg7[%170, %c0_39, %c0_40], %173 {strides = array<i32>} : memref<5x2x32xf32, #tpu.memory_space<vmem>>, vector<1x2x32xf32>,
    %c2_i32 = arith.constant 2 : i32
    %174 = arith.truncf %169 : vector<2x32xf32> to vector<2x32xbf16>
    %cst_41 = arith.constant dense<0.000000e+00> : vector<2x152xf32>
    %175 = tpu.matmul %174, %12, %cst_41 {dimension_numbers = #tpu.dot_dimension_numbers<[1], [0], [0], [1], [0, 0, 1, 1], [], []>} : vector<2x32xbf16>, vector<32x152xbf16>, vector<2x152xf32> -> vector<2x152xf32>
    %176 = arith.addf %175, %15 : vector<2x152xf32>
    %177 = vector.extract_strided_slice %176 {offsets = [0, 0], sizes = [2, 128], strides = [1, 1]} : vector<2x152xf32> to vector<2x128xf32>
    %178 = vector.extract_strided_slice %176 {offsets = [0, 128], sizes = [2, 8], strides = [1, 1]} : vector<2x152xf32> to vector<2x8xf32>
    %cst_42 = arith.constant dense<0xFF800000> : vector<2xf32>
    %179 = vector.multi_reduction <maximumf>, %178, %cst_42 [1] : vector<2x8xf32> to vector<2xf32>
    %180 = vector.shape_cast %179 : vector<2xf32> to vector<2x1xf32>
    %181 = vector.broadcast %180 : vector<2x1xf32> to vector<2x8xf32>
    %182 = arith.subf %178, %181 : vector<2x8xf32>
    %183 = math.exp %182 : vector<2x8xf32>
    %cst_43 = arith.constant dense<0.000000e+00> : vector<2xf32>
    %184 = vector.multi_reduction <add>, %183, %cst_43 [1] : vector<2x8xf32> to vector<2xf32>
    %185 = vector.shape_cast %184 : vector<2xf32> to vector<2x1xf32>
    %186 = vector.broadcast %185 : vector<2x1xf32> to vector<2x8xf32>
    %187 = arith.divf %183, %186 : vector<2x8xf32>
    %188 = arith.truncf %187 : vector<2x8xf32> to vector<2x8xbf16>
    %189 = vector.shape_cast %188 : vector<2x8xbf16> to vector<2x1x8xbf16>
    "tpu.trace_start"() <{level = 10 : i32, message = "bml,blg->bmg"}> : () -> ()
    %cst_44 = arith.constant dense<0.000000e+00> : vector<2x1x128xf32>
    %190 = tpu.matmul %189, %5, %cst_44 {dimension_numbers = #tpu.dot_dimension_numbers<[2], [1], [1], [2], [0, 0, 0, 1, 1, 2], [0], [0]>} : vector<2x1x8xbf16>, vector<2x8x128xbf16>, vector<2x1x128xf32> -> vector<2x1x128xf32>
    "tpu.trace_stop"() : () -> ()
    %191 = vector.shape_cast %190 : vector<2x1x128xf32> to vector<2x128xf32>
    %192 = arith.addf %177, %191 : vector<2x128xf32>
    %193 = vector.extract_strided_slice %176 {offsets = [0, 136], sizes = [2, 8], strides = [1, 1]} : vector<2x152xf32> to vector<2x8xf32>
    %cst_45 = arith.constant dense<0xFF800000> : vector<2xf32>
    %194 = vector.multi_reduction <maximumf>, %193, %cst_45 [1] : vector<2x8xf32> to vector<2xf32>
    %195 = vector.shape_cast %194 : vector<2xf32> to vector<2x1xf32>
    %196 = vector.broadcast %195 : vector<2x1xf32> to vector<2x8xf32>
    %197 = arith.subf %193, %196 : vector<2x8xf32>
    %198 = math.exp %197 : vector<2x8xf32>
    %cst_46 = arith.constant dense<0.000000e+00> : vector<2xf32>
    %199 = vector.multi_reduction <add>, %198, %cst_46 [1] : vector<2x8xf32> to vector<2xf32>
    %200 = vector.shape_cast %199 : vector<2xf32> to vector<2x1xf32>
    %201 = vector.broadcast %200 : vector<2x1xf32> to vector<2x8xf32>
    %202 = arith.divf %198, %201 : vector<2x8xf32>
    %203 = arith.truncf %202 : vector<2x8xf32> to vector<2x8xbf16>
    %204 = vector.shape_cast %203 : vector<2x8xbf16> to vector<2x1x8xbf16>
    "tpu.trace_start"() <{level = 10 : i32, message = "bml,blg->bmg"}> : () -> ()
    %cst_47 = arith.constant dense<0.000000e+00> : vector<2x1x128xf32>
    %205 = tpu.matmul %204, %8, %cst_47 {dimension_numbers = #tpu.dot_dimension_numbers<[2], [1], [1], [2], [0, 0, 0, 1, 1, 2], [0], [0]>} : vector<2x1x8xbf16>, vector<2x8x128xbf16>, vector<2x1x128xf32> -> vector<2x1x128xf32>
    "tpu.trace_stop"() : () -> ()
    %206 = vector.shape_cast %205 : vector<2x1x128xf32> to vector<2x128xf32>
    %207 = arith.addf %192, %206 : vector<2x128xf32>
    %208 = vector.extract_strided_slice %176 {offsets = [0, 144], sizes = [2, 8], strides = [1, 1]} : vector<2x152xf32> to vector<2x8xf32>
    %cst_48 = arith.constant dense<0xFF800000> : vector<2xf32>
    %209 = vector.multi_reduction <maximumf>, %208, %cst_48 [1] : vector<2x8xf32> to vector<2xf32>
    %210 = vector.shape_cast %209 : vector<2xf32> to vector<2x1xf32>
    %211 = vector.broadcast %210 : vector<2x1xf32> to vector<2x8xf32>
    %212 = arith.subf %208, %211 : vector<2x8xf32>
    %213 = math.exp %212 : vector<2x8xf32>
    %cst_49 = arith.constant dense<0.000000e+00> : vector<2xf32>
    %214 = vector.multi_reduction <add>, %213, %cst_49 [1] : vector<2x8xf32> to vector<2xf32>
    %215 = vector.shape_cast %214 : vector<2xf32> to vector<2x1xf32>
    %216 = vector.broadcast %215 : vector<2x1xf32> to vector<2x8xf32>
    %217 = arith.divf %213, %216 : vector<2x8xf32>
    %218 = arith.truncf %217 : vector<2x8xf32> to vector<2x8xbf16>
    %219 = vector.shape_cast %218 : vector<2x8xbf16> to vector<2x1x8xbf16>
    "tpu.trace_start"() <{level = 10 : i32, message = "bml,blg->bmg"}> : () -> ()
    %cst_50 = arith.constant dense<0.000000e+00> : vector<2x1x128xf32>
    %220 = tpu.matmul %219, %11, %cst_50 {dimension_numbers = #tpu.dot_dimension_numbers<[2], [1], [1], [2], [0, 0, 0, 1, 1, 2], [0], [0]>} : vector<2x1x8xbf16>, vector<2x8x128xbf16>, vector<2x1x128xf32> -> vector<2x1x128xf32>
    "tpu.trace_stop"() : () -> ()
    %221 = vector.shape_cast %220 : vector<2x1x128xf32> to vector<2x128xf32>
    %222 = arith.addf %207, %221 : vector<2x128xf32>
    %223 = vector.extract_strided_slice %222 {offsets = [0, 0], sizes = [2, 32], strides = [1, 1]} : vector<2x128xf32> to vector<2x32xf32>
    %224 = arith.negf %223 : vector<2x32xf32>
    %225 = math.exp %224 : vector<2x32xf32>
    %cst_51 = arith.constant 1.000000e+00 : f32
    %226 = vector.broadcast %cst_51 : f32 to vector<2x32xf32>
    %227 = arith.addf %226, %225 : vector<2x32xf32>
    %228 = arith.divf %226, %227 : vector<2x32xf32>
    %229 = vector.extract_strided_slice %222 {offsets = [0, 32], sizes = [2, 32], strides = [1, 1]} : vector<2x128xf32> to vector<2x32xf32>
    %230 = arith.negf %229 : vector<2x32xf32>
    %231 = math.exp %230 : vector<2x32xf32>
    %cst_52 = arith.constant 1.000000e+00 : f32
    %232 = vector.broadcast %cst_52 : f32 to vector<2x32xf32>
    %233 = arith.addf %232, %231 : vector<2x32xf32>
    %234 = arith.divf %232, %233 : vector<2x32xf32>
    %235 = vector.extract_strided_slice %222 {offsets = [0, 64], sizes = [2, 32], strides = [1, 1]} : vector<2x128xf32> to vector<2x32xf32>
    %236 = math.tanh %235 : vector<2x32xf32>
    %237 = vector.extract_strided_slice %222 {offsets = [0, 96], sizes = [2, 32], strides = [1, 1]} : vector<2x128xf32> to vector<2x32xf32>
    %238 = arith.negf %237 : vector<2x32xf32>
    %239 = math.exp %238 : vector<2x32xf32>
    %cst_53 = arith.constant 1.000000e+00 : f32
    %240 = vector.broadcast %cst_53 : f32 to vector<2x32xf32>
    %241 = arith.addf %240, %239 : vector<2x32xf32>
    %242 = arith.divf %240, %241 : vector<2x32xf32>
    %243 = arith.mulf %234, %167 : vector<2x32xf32>
    %244 = arith.mulf %228, %236 : vector<2x32xf32>
    %245 = arith.addf %243, %244 : vector<2x32xf32>
    %246 = math.tanh %245 : vector<2x32xf32>
    %247 = arith.mulf %242, %246 : vector<2x32xf32>
    %248 = arith.index_cast %c2_i32 : i32 to index
    %c0_54 = arith.constant 0 : index
    %c0_55 = arith.constant 0 : index
    %249 = vector.load %arg7[%248, %c0_54, %c0_55] : memref<5x2x32xf32, #tpu.memory_space<vmem>>, vector<1x2x32xf32>
    %250 = vector.shape_cast %249 : vector<1x2x32xf32> to vector<2x32xf32>
    %251 = vector.shape_cast %247 : vector<2x32xf32> to vector<1x2x32xf32>
    tpu.vector_store %arg7[%248, %c0_54, %c0_55], %251 {strides = array<i32>} : memref<5x2x32xf32, #tpu.memory_space<vmem>>, vector<1x2x32xf32>,
    %c3_i32 = arith.constant 3 : i32
    %252 = arith.truncf %247 : vector<2x32xf32> to vector<2x32xbf16>
    %cst_56 = arith.constant dense<0.000000e+00> : vector<2x152xf32>
    %253 = tpu.matmul %252, %12, %cst_56 {dimension_numbers = #tpu.dot_dimension_numbers<[1], [0], [0], [1], [0, 0, 1, 1], [], []>} : vector<2x32xbf16>, vector<32x152xbf16>, vector<2x152xf32> -> vector<2x152xf32>
    %254 = arith.addf %253, %15 : vector<2x152xf32>
    %255 = vector.extract_strided_slice %254 {offsets = [0, 0], sizes = [2, 128], strides = [1, 1]} : vector<2x152xf32> to vector<2x128xf32>
    %256 = vector.extract_strided_slice %254 {offsets = [0, 128], sizes = [2, 8], strides = [1, 1]} : vector<2x152xf32> to vector<2x8xf32>
    %cst_57 = arith.constant dense<0xFF800000> : vector<2xf32>
    %257 = vector.multi_reduction <maximumf>, %256, %cst_57 [1] : vector<2x8xf32> to vector<2xf32>
    %258 = vector.shape_cast %257 : vector<2xf32> to vector<2x1xf32>
    %259 = vector.broadcast %258 : vector<2x1xf32> to vector<2x8xf32>
    %260 = arith.subf %256, %259 : vector<2x8xf32>
    %261 = math.exp %260 : vector<2x8xf32>
    %cst_58 = arith.constant dense<0.000000e+00> : vector<2xf32>
    %262 = vector.multi_reduction <add>, %261, %cst_58 [1] : vector<2x8xf32> to vector<2xf32>
    %263 = vector.shape_cast %262 : vector<2xf32> to vector<2x1xf32>
    %264 = vector.broadcast %263 : vector<2x1xf32> to vector<2x8xf32>
    %265 = arith.divf %261, %264 : vector<2x8xf32>
    %266 = arith.truncf %265 : vector<2x8xf32> to vector<2x8xbf16>
    %267 = vector.shape_cast %266 : vector<2x8xbf16> to vector<2x1x8xbf16>
    "tpu.trace_start"() <{level = 10 : i32, message = "bml,blg->bmg"}> : () -> ()
    %cst_59 = arith.constant dense<0.000000e+00> : vector<2x1x128xf32>
    %268 = tpu.matmul %267, %5, %cst_59 {dimension_numbers = #tpu.dot_dimension_numbers<[2], [1], [1], [2], [0, 0, 0, 1, 1, 2], [0], [0]>} : vector<2x1x8xbf16>, vector<2x8x128xbf16>, vector<2x1x128xf32> -> vector<2x1x128xf32>
    "tpu.trace_stop"() : () -> ()
    %269 = vector.shape_cast %268 : vector<2x1x128xf32> to vector<2x128xf32>
    %270 = arith.addf %255, %269 : vector<2x128xf32>
    %271 = vector.extract_strided_slice %254 {offsets = [0, 136], sizes = [2, 8], strides = [1, 1]} : vector<2x152xf32> to vector<2x8xf32>
    %cst_60 = arith.constant dense<0xFF800000> : vector<2xf32>
    %272 = vector.multi_reduction <maximumf>, %271, %cst_60 [1] : vector<2x8xf32> to vector<2xf32>
    %273 = vector.shape_cast %272 : vector<2xf32> to vector<2x1xf32>
    %274 = vector.broadcast %273 : vector<2x1xf32> to vector<2x8xf32>
    %275 = arith.subf %271, %274 : vector<2x8xf32>
    %276 = math.exp %275 : vector<2x8xf32>
    %cst_61 = arith.constant dense<0.000000e+00> : vector<2xf32>
    %277 = vector.multi_reduction <add>, %276, %cst_61 [1] : vector<2x8xf32> to vector<2xf32>
    %278 = vector.shape_cast %277 : vector<2xf32> to vector<2x1xf32>
    %279 = vector.broadcast %278 : vector<2x1xf32> to vector<2x8xf32>
    %280 = arith.divf %276, %279 : vector<2x8xf32>
    %281 = arith.truncf %280 : vector<2x8xf32> to vector<2x8xbf16>
    %282 = vector.shape_cast %281 : vector<2x8xbf16> to vector<2x1x8xbf16>
    "tpu.trace_start"() <{level = 10 : i32, message = "bml,blg->bmg"}> : () -> ()
    %cst_62 = arith.constant dense<0.000000e+00> : vector<2x1x128xf32>
    %283 = tpu.matmul %282, %8, %cst_62 {dimension_numbers = #tpu.dot_dimension_numbers<[2], [1], [1], [2], [0, 0, 0, 1, 1, 2], [0], [0]>} : vector<2x1x8xbf16>, vector<2x8x128xbf16>, vector<2x1x128xf32> -> vector<2x1x128xf32>
    "tpu.trace_stop"() : () -> ()
    %284 = vector.shape_cast %283 : vector<2x1x128xf32> to vector<2x128xf32>
    %285 = arith.addf %270, %284 : vector<2x128xf32>
    %286 = vector.extract_strided_slice %254 {offsets = [0, 144], sizes = [2, 8], strides = [1, 1]} : vector<2x152xf32> to vector<2x8xf32>
    %cst_63 = arith.constant dense<0xFF800000> : vector<2xf32>
    %287 = vector.multi_reduction <maximumf>, %286, %cst_63 [1] : vector<2x8xf32> to vector<2xf32>
    %288 = vector.shape_cast %287 : vector<2xf32> to vector<2x1xf32>
    %289 = vector.broadcast %288 : vector<2x1xf32> to vector<2x8xf32>
    %290 = arith.subf %286, %289 : vector<2x8xf32>
    %291 = math.exp %290 : vector<2x8xf32>
    %cst_64 = arith.constant dense<0.000000e+00> : vector<2xf32>
    %292 = vector.multi_reduction <add>, %291, %cst_64 [1] : vector<2x8xf32> to vector<2xf32>
    %293 = vector.shape_cast %292 : vector<2xf32> to vector<2x1xf32>
    %294 = vector.broadcast %293 : vector<2x1xf32> to vector<2x8xf32>
    %295 = arith.divf %291, %294 : vector<2x8xf32>
    %296 = arith.truncf %295 : vector<2x8xf32> to vector<2x8xbf16>
    %297 = vector.shape_cast %296 : vector<2x8xbf16> to vector<2x1x8xbf16>
    "tpu.trace_start"() <{level = 10 : i32, message = "bml,blg->bmg"}> : () -> ()
    %cst_65 = arith.constant dense<0.000000e+00> : vector<2x1x128xf32>
    %298 = tpu.matmul %297, %11, %cst_65 {dimension_numbers = #tpu.dot_dimension_numbers<[2], [1], [1], [2], [0, 0, 0, 1, 1, 2], [0], [0]>} : vector<2x1x8xbf16>, vector<2x8x128xbf16>, vector<2x1x128xf32> -> vector<2x1x128xf32>
    "tpu.trace_stop"() : () -> ()
    %299 = vector.shape_cast %298 : vector<2x1x128xf32> to vector<2x128xf32>
    %300 = arith.addf %285, %299 : vector<2x128xf32>
    %301 = vector.extract_strided_slice %300 {offsets = [0, 0], sizes = [2, 32], strides = [1, 1]} : vector<2x128xf32> to vector<2x32xf32>
    %302 = arith.negf %301 : vector<2x32xf32>
    %303 = math.exp %302 : vector<2x32xf32>
    %cst_66 = arith.constant 1.000000e+00 : f32
    %304 = vector.broadcast %cst_66 : f32 to vector<2x32xf32>
    %305 = arith.addf %304, %303 : vector<2x32xf32>
    %306 = arith.divf %304, %305 : vector<2x32xf32>
    %307 = vector.extract_strided_slice %300 {offsets = [0, 32], sizes = [2, 32], strides = [1, 1]} : vector<2x128xf32> to vector<2x32xf32>
    %308 = arith.negf %307 : vector<2x32xf32>
    %309 = math.exp %308 : vector<2x32xf32>
    %cst_67 = arith.constant 1.000000e+00 : f32
    %310 = vector.broadcast %cst_67 : f32 to vector<2x32xf32>
    %311 = arith.addf %310, %309 : vector<2x32xf32>
    %312 = arith.divf %310, %311 : vector<2x32xf32>
    %313 = vector.extract_strided_slice %300 {offsets = [0, 64], sizes = [2, 32], strides = [1, 1]} : vector<2x128xf32> to vector<2x32xf32>
    %314 = math.tanh %313 : vector<2x32xf32>
    %315 = vector.extract_strided_slice %300 {offsets = [0, 96], sizes = [2, 32], strides = [1, 1]} : vector<2x128xf32> to vector<2x32xf32>
    %316 = arith.negf %315 : vector<2x32xf32>
    %317 = math.exp %316 : vector<2x32xf32>
    %cst_68 = arith.constant 1.000000e+00 : f32
    %318 = vector.broadcast %cst_68 : f32 to vector<2x32xf32>
    %319 = arith.addf %318, %317 : vector<2x32xf32>
    %320 = arith.divf %318, %319 : vector<2x32xf32>
    %321 = arith.mulf %312, %245 : vector<2x32xf32>
    %322 = arith.mulf %306, %314 : vector<2x32xf32>
    %323 = arith.addf %321, %322 : vector<2x32xf32>
    %324 = math.tanh %323 : vector<2x32xf32>
    %325 = arith.mulf %320, %324 : vector<2x32xf32>
    %326 = arith.index_cast %c3_i32 : i32 to index
    %c0_69 = arith.constant 0 : index
    %c0_70 = arith.constant 0 : index
    %327 = vector.load %arg7[%326, %c0_69, %c0_70] : memref<5x2x32xf32, #tpu.memory_space<vmem>>, vector<1x2x32xf32>
    %328 = vector.shape_cast %327 : vector<1x2x32xf32> to vector<2x32xf32>
    %329 = vector.shape_cast %325 : vector<2x32xf32> to vector<1x2x32xf32>
    tpu.vector_store %arg7[%326, %c0_69, %c0_70], %329 {strides = array<i32>} : memref<5x2x32xf32, #tpu.memory_space<vmem>>, vector<1x2x32xf32>,
    %c4_i32 = arith.constant 4 : i32
    %330 = arith.truncf %325 : vector<2x32xf32> to vector<2x32xbf16>
    %cst_71 = arith.constant dense<0.000000e+00> : vector<2x152xf32>
    %331 = tpu.matmul %330, %12, %cst_71 {dimension_numbers = #tpu.dot_dimension_numbers<[1], [0], [0], [1], [0, 0, 1, 1], [], []>} : vector<2x32xbf16>, vector<32x152xbf16>, vector<2x152xf32> -> vector<2x152xf32>
    %332 = arith.addf %331, %15 : vector<2x152xf32>
    %333 = vector.extract_strided_slice %332 {offsets = [0, 0], sizes = [2, 128], strides = [1, 1]} : vector<2x152xf32> to vector<2x128xf32>
    %334 = vector.extract_strided_slice %332 {offsets = [0, 128], sizes = [2, 8], strides = [1, 1]} : vector<2x152xf32> to vector<2x8xf32>
    %cst_72 = arith.constant dense<0xFF800000> : vector<2xf32>
    %335 = vector.multi_reduction <maximumf>, %334, %cst_72 [1] : vector<2x8xf32> to vector<2xf32>
    %336 = vector.shape_cast %335 : vector<2xf32> to vector<2x1xf32>
    %337 = vector.broadcast %336 : vector<2x1xf32> to vector<2x8xf32>
    %338 = arith.subf %334, %337 : vector<2x8xf32>
    %339 = math.exp %338 : vector<2x8xf32>
    %cst_73 = arith.constant dense<0.000000e+00> : vector<2xf32>
    %340 = vector.multi_reduction <add>, %339, %cst_73 [1] : vector<2x8xf32> to vector<2xf32>
    %341 = vector.shape_cast %340 : vector<2xf32> to vector<2x1xf32>
    %342 = vector.broadcast %341 : vector<2x1xf32> to vector<2x8xf32>
    %343 = arith.divf %339, %342 : vector<2x8xf32>
    %344 = arith.truncf %343 : vector<2x8xf32> to vector<2x8xbf16>
    %345 = vector.shape_cast %344 : vector<2x8xbf16> to vector<2x1x8xbf16>
    "tpu.trace_start"() <{level = 10 : i32, message = "bml,blg->bmg"}> : () -> ()
    %cst_74 = arith.constant dense<0.000000e+00> : vector<2x1x128xf32>
    %346 = tpu.matmul %345, %5, %cst_74 {dimension_numbers = #tpu.dot_dimension_numbers<[2], [1], [1], [2], [0, 0, 0, 1, 1, 2], [0], [0]>} : vector<2x1x8xbf16>, vector<2x8x128xbf16>, vector<2x1x128xf32> -> vector<2x1x128xf32>
    "tpu.trace_stop"() : () -> ()
    %347 = vector.shape_cast %346 : vector<2x1x128xf32> to vector<2x128xf32>
    %348 = arith.addf %333, %347 : vector<2x128xf32>
    %349 = vector.extract_strided_slice %332 {offsets = [0, 136], sizes = [2, 8], strides = [1, 1]} : vector<2x152xf32> to vector<2x8xf32>
    %cst_75 = arith.constant dense<0xFF800000> : vector<2xf32>
    %350 = vector.multi_reduction <maximumf>, %349, %cst_75 [1] : vector<2x8xf32> to vector<2xf32>
    %351 = vector.shape_cast %350 : vector<2xf32> to vector<2x1xf32>
    %352 = vector.broadcast %351 : vector<2x1xf32> to vector<2x8xf32>
    %353 = arith.subf %349, %352 : vector<2x8xf32>
    %354 = math.exp %353 : vector<2x8xf32>
    %cst_76 = arith.constant dense<0.000000e+00> : vector<2xf32>
    %355 = vector.multi_reduction <add>, %354, %cst_76 [1] : vector<2x8xf32> to vector<2xf32>
    %356 = vector.shape_cast %355 : vector<2xf32> to vector<2x1xf32>
    %357 = vector.broadcast %356 : vector<2x1xf32> to vector<2x8xf32>
    %358 = arith.divf %354, %357 : vector<2x8xf32>
    %359 = arith.truncf %358 : vector<2x8xf32> to vector<2x8xbf16>
    %360 = vector.shape_cast %359 : vector<2x8xbf16> to vector<2x1x8xbf16>
    "tpu.trace_start"() <{level = 10 : i32, message = "bml,blg->bmg"}> : () -> ()
    %cst_77 = arith.constant dense<0.000000e+00> : vector<2x1x128xf32>
    %361 = tpu.matmul %360, %8, %cst_77 {dimension_numbers = #tpu.dot_dimension_numbers<[2], [1], [1], [2], [0, 0, 0, 1, 1, 2], [0], [0]>} : vector<2x1x8xbf16>, vector<2x8x128xbf16>, vector<2x1x128xf32> -> vector<2x1x128xf32>
    "tpu.trace_stop"() : () -> ()
    %362 = vector.shape_cast %361 : vector<2x1x128xf32> to vector<2x128xf32>
    %363 = arith.addf %348, %362 : vector<2x128xf32>
    %364 = vector.extract_strided_slice %332 {offsets = [0, 144], sizes = [2, 8], strides = [1, 1]} : vector<2x152xf32> to vector<2x8xf32>
    %cst_78 = arith.constant dense<0xFF800000> : vector<2xf32>
    %365 = vector.multi_reduction <maximumf>, %364, %cst_78 [1] : vector<2x8xf32> to vector<2xf32>
    %366 = vector.shape_cast %365 : vector<2xf32> to vector<2x1xf32>
    %367 = vector.broadcast %366 : vector<2x1xf32> to vector<2x8xf32>
    %368 = arith.subf %364, %367 : vector<2x8xf32>
    %369 = math.exp %368 : vector<2x8xf32>
    %cst_79 = arith.constant dense<0.000000e+00> : vector<2xf32>
    %370 = vector.multi_reduction <add>, %369, %cst_79 [1] : vector<2x8xf32> to vector<2xf32>
    %371 = vector.shape_cast %370 : vector<2xf32> to vector<2x1xf32>
    %372 = vector.broadcast %371 : vector<2x1xf32> to vector<2x8xf32>
    %373 = arith.divf %369, %372 : vector<2x8xf32>
    %374 = arith.truncf %373 : vector<2x8xf32> to vector<2x8xbf16>
    %375 = vector.shape_cast %374 : vector<2x8xbf16> to vector<2x1x8xbf16>
    "tpu.trace_start"() <{level = 10 : i32, message = "bml,blg->bmg"}> : () -> ()
    %cst_80 = arith.constant dense<0.000000e+00> : vector<2x1x128xf32>
    %376 = tpu.matmul %375, %11, %cst_80 {dimension_numbers = #tpu.dot_dimension_numbers<[2], [1], [1], [2], [0, 0, 0, 1, 1, 2], [0], [0]>} : vector<2x1x8xbf16>, vector<2x8x128xbf16>, vector<2x1x128xf32> -> vector<2x1x128xf32>
    "tpu.trace_stop"() : () -> ()
    %377 = vector.shape_cast %376 : vector<2x1x128xf32> to vector<2x128xf32>
    %378 = arith.addf %363, %377 : vector<2x128xf32>
    %379 = vector.extract_strided_slice %378 {offsets = [0, 0], sizes = [2, 32], strides = [1, 1]} : vector<2x128xf32> to vector<2x32xf32>
    %380 = arith.negf %379 : vector<2x32xf32>
    %381 = math.exp %380 : vector<2x32xf32>
    %cst_81 = arith.constant 1.000000e+00 : f32
    %382 = vector.broadcast %cst_81 : f32 to vector<2x32xf32>
    %383 = arith.addf %382, %381 : vector<2x32xf32>
    %384 = arith.divf %382, %383 : vector<2x32xf32>
    %385 = vector.extract_strided_slice %378 {offsets = [0, 32], sizes = [2, 32], strides = [1, 1]} : vector<2x128xf32> to vector<2x32xf32>
    %386 = arith.negf %385 : vector<2x32xf32>
    %387 = math.exp %386 : vector<2x32xf32>
    %cst_82 = arith.constant 1.000000e+00 : f32
    %388 = vector.broadcast %cst_82 : f32 to vector<2x32xf32>
    %389 = arith.addf %388, %387 : vector<2x32xf32>
    %390 = arith.divf %388, %389 : vector<2x32xf32>
    %391 = vector.extract_strided_slice %378 {offsets = [0, 64], sizes = [2, 32], strides = [1, 1]} : vector<2x128xf32> to vector<2x32xf32>
    %392 = math.tanh %391 : vector<2x32xf32>
    %393 = vector.extract_strided_slice %378 {offsets = [0, 96], sizes = [2, 32], strides = [1, 1]} : vector<2x128xf32> to vector<2x32xf32>
    %394 = arith.negf %393 : vector<2x32xf32>
    %395 = math.exp %394 : vector<2x32xf32>
    %cst_83 = arith.constant 1.000000e+00 : f32
    %396 = vector.broadcast %cst_83 : f32 to vector<2x32xf32>
    %397 = arith.addf %396, %395 : vector<2x32xf32>
    %398 = arith.divf %396, %397 : vector<2x32xf32>
    %399 = arith.mulf %390, %323 : vector<2x32xf32>
    %400 = arith.mulf %384, %392 : vector<2x32xf32>
    %401 = arith.addf %399, %400 : vector<2x32xf32>
    %402 = math.tanh %401 : vector<2x32xf32>
    %403 = arith.mulf %398, %402 : vector<2x32xf32>
    %404 = arith.index_cast %c4_i32 : i32 to index
    %c0_84 = arith.constant 0 : index
    %c0_85 = arith.constant 0 : index
    %405 = vector.load %arg7[%404, %c0_84, %c0_85] : memref<5x2x32xf32, #tpu.memory_space<vmem>>, vector<1x2x32xf32>
    %406 = vector.shape_cast %405 : vector<1x2x32xf32> to vector<2x32xf32>
    %407 = vector.shape_cast %403 : vector<2x32xf32> to vector<1x2x32xf32>
    tpu.vector_store %arg7[%404, %c0_84, %c0_85], %407 {strides = array<i32>} : memref<5x2x32xf32, #tpu.memory_space<vmem>>, vector<1x2x32xf32>,
    %c5_i32 = arith.constant 5 : i32
    return
  }
  func.func @transform_0(%arg0: i32) -> (i32, i32) {
    %c0_i32 = arith.constant 0 : i32
    %c0_i32_0 = arith.constant 0 : i32
    %c0_i32_1 = arith.constant 0 : i32
    return %c0_i32, %c0_i32_0 : i32, i32
  }
  func.func @transform_1(%arg0: i32) -> (i32, i32) {
    %c0_i32 = arith.constant 0 : i32
    %c0_i32_0 = arith.constant 0 : i32
    %c0_i32_1 = arith.constant 0 : i32
    return %c0_i32, %c0_i32_0 : i32, i32
  }
  func.func @transform_2(%arg0: i32) -> (i32, i32) {
    %c0_i32 = arith.constant 0 : i32
    %c0_i32_0 = arith.constant 0 : i32
    %c0_i32_1 = arith.constant 0 : i32
    return %c0_i32, %c0_i32_0 : i32, i32
  }
  func.func @transform_3(%arg0: i32) -> (i32, i32) {
    %c0_i32 = arith.constant 0 : i32
    %c0_i32_0 = arith.constant 0 : i32
    %c0_i32_1 = arith.constant 0 : i32
    return %c0_i32, %c0_i32_0 : i32, i32
  }
  func.func @transform_4(%arg0: i32) -> (i32, i32) {
    %c0_i32 = arith.constant 0 : i32
    %c0_i32_0 = arith.constant 0 : i32
    %c0_i32_1 = arith.constant 0 : i32
    return %c0_i32, %c0_i32_0 : i32, i32
  }
  func.func @transform_5(%arg0: i32) -> (i32, i32) {
    %c0_i32 = arith.constant 0 : i32
    %c0_i32_0 = arith.constant 0 : i32
    %c0_i32_1 = arith.constant 0 : i32
    return %c0_i32, %c0_i32_0 : i32, i32
  }
  func.func @transform_6(%arg0: i32) -> (i32, i32, i32) {
    %c0_i32 = arith.constant 0 : i32
    %c0_i32_0 = arith.constant 0 : i32
    %c0_i32_1 = arith.constant 0 : i32
    %c0_i32_2 = arith.constant 0 : i32
    return %c0_i32, %c0_i32_0, %c0_i32_1 : i32, i32, i32
  }
}

</mosaic_0001>

<bundles_post_ra>
// kernel: tpu_custom_call.1
= control target key start
LH: loop header
LB: loop body
LE: loop exit
PB: predicated region body
PF: predicated region fallthrough
CT: control target
= control target key end

     0   :  { %11 = vsyncpa [#allocation3], 0  ;;  %s3731_s0 = inlined_call_operand.vmem [shape: bf16[16,4], index: 0, kind: input, shape index: {}]   ;;  %s3732_s1 = inlined_call_operand.vmem [shape: f32[2,32], index: 1, kind: input, shape index: {}]   ;;  %s3733_s2 = inlined_call_operand.vmem [shape: f32[2,32], index: 2, kind: input, shape index: {}]   ;;  %s3734_s3 = inlined_call_operand.vmem [shape: bf16[4,384], index: 3, kind: input, shape index: {}]   ;;  %s3735_s4 = inlined_call_operand.hbm [shape: bf16[32,152], index: 4, kind: input, shape index: {}]   ;;  %s3736_s5 = inlined_call_operand.vmem [shape: f32[1,152], index: 5, kind: input, shape index: {}]   ;;  %s3737_s6 = inlined_call_operand.hbm [shape: f32[5,2,32], index: 6, kind: output, shape index: {}]  }
   0x1   :  { %12 = vsyncpa [#allocation4], 0  ;;  %s3169_s21 = smov [#allocation2]   ;;  %s3121_s25 = scalar_lea.hbm %s3735_s4, 512 }
   0x2   :  { %s26_s22 = sshll.u32 %s3169_s21, 4  ;;  %p3122_p0 = scmp.ne.s32.totalorder %s3735_s4, %s3121_s25  ;;  %s27_s22 = int_to_ptr.vmem [resolvable:$true] %s26_s22 }
   0x3   :  { %p3125_p1 = scmp.lt.u32.totalorder %s3121_s25, %s3735_s4 }
   0x5   :  { %p3127_p2 = pnand %p3125_p1, %p3122_p0 }
   0x7   :  { %3130 = shalt.err (!%p3127_p2)
}
   0x8   :  { %s3131_s30 = scalar_lea.vmem %s27_s22, 512  ;;  %p3136_p4 = scmp.lt.s32.totalorder %s27_s22, %s27_s22 }
   0x9   :  { %p3132_p3 = scmp.ne.s32.totalorder %s27_s22, %s3131_s30  ;;  %p3137_p5 = scmp.lt.s32.totalorder %s3131_s30, %s3131_s30 }
   0xb   :  { %p3138_p6 = por %p3137_p5, %p3136_p4 }
   0xd   :  { %p3139_p7 = pnand %p3138_p6, %p3132_p3 }
   0xf   :  { %3142 = shalt.err (!%p3139_p7)
}
  0x10   :  { %s3170_s7 = smov 128   ;;  %s3171_s8 = smov 8  }
  0x11   :  { %32 = dma.hbm_to_vmem [thread:$0]  %s3735_s4, 512, %s27_s22, [#allocation3], %s3170_s7, %s3170_s7, %s3171_s8  }
  0x12   :  { %3165 = dma.done.wait [#allocation3], 512  }
  0x13   :  { %3166 = vsyncadd [#allocation3], 4294966784  ;;  %v52_v0 = vlaneseq  ;;  %v3172_v1 = vmov 1983009808   ;;  %v3173_v3 = vmov 0   ;;  %vm68_vm0 = vcmask 1041408  }
  0x14   :  { %v50_v2 = vunpack.c.l.s4 %v3172_v1  ;;  %110 = vmatprep.mubr.bf16.mxu0 %v3173_v3  ;;  %v41_v7 = vld [vmem:[%s3734_s3] sm:$0x3f]  ;;  %v3238_v11 = vld [vmem:[#allocation2 + $0x4] ss:$8 sps:$4 sm:$0xff]   ;;  %vm64_vm1 = vcmask 31744   ;;  %vm207_vm2 = vcmask 261120  }
  0x15   :  { %v3231_v4 = vshrl.u32 %v52_v0, 7  ;;  %v3009_v12 = vld [vmem:[%s3731_s0] sm:$0xff]   ;;  %v3244_v13 = vld [vmem:[#allocation2] ss:$8 sps:$4 sm:$0xff]   ;;  %v48_v18 = vcombine.high %v41_v7, %v41_v7  ;;  %v3174_v20 = vmov 0.0   ;;  %vm3175_vm3 = vmmov 0  }
  0x16   :  { %v51_v5 = vunpack.c.0.s8 %v50_v2  ;;  %v3247_v14 = vld [vmem:[#allocation2 + $0x14] ss:$8 sps:$4 sm:$0xff]   ;;  %v3251_v15 = vld [vmem:[#allocation2 + $0x10] ss:$8 sps:$4 sm:$0xff]   ;;  %2809 = vmatprep.subr.bf16.mxu1 %v3174_v20  ;;  %2811 = vmatprep.mubr.msk.bf16.mxu1 %vm3175_vm3, %v3174_v20  ;;  %vm291_vm4 = vcmask 1043456   ;;  %vm393_vm5 = vcmask 123968  }
  0x17   :  { %v184_v16 = vld [vmem:[%s3732_s1] sm:$0x3]  ;;  %v180_v26 = vsub.s32 1, %v3231_v4  ;;  %vm539_vm6 = vcmask 189568   ;;  %vm252_vm7 = vcmask 58368   ;;  %s3177_s15 = smov 112  }
  0x18   :  { %v54_v6 = vsub.s32 %v51_v5, %v3231_v4  ;;  %v186_v17 = vpack.c.bf16 %v184_v16, %v184_v16  ;;  %v3282_v30 = vld [vmem:[%s3736_s5] sm:$0x3]  ;;  %s3176_s5 = smov 120   ;;  %v3178_v63 = vmov 1966171168   ;;  %vm287_vm8 = vcmask 64512  }
  0x19   :  { %v3291_v32 = vrot.slane %v3282_v30, %v180_v26  ;;  %v267_v0 = vunpack.c.l.s4 %v3178_v63  ;;  %vm389_vm9 = vcmask 1041409   ;;  %s3179_s16 = smov 64   ;;  %s3180_s19 = smov 32   ;;  %vm717_vm10 = vcmask 254976  }
  0x1a   :  { %v55_v8 = vrot.slane %v41_v7, %v54_v6  ;;  %v62_v19 = vrot.slane %v48_v18, %v54_v6 }
  0x1b   :  { %v268_v2 = vunpack.c.0.s8 %v267_v0 }
  0x1c   :  { %v63_v9 = vcombine.high %v55_v8, %v55_v8  ;;  %v70_v10 = vsel %vm68_vm0, %v55_v8, 0  ;;  %v76_v21 = vsel %vm68_vm0, %v62_v19, 0 }
  0x1d   :  { %2810 = vmatpush3.bf16.msra.mxu1 %v76_v21  ;;  %v3310_v7 = vsub.s32 %v268_v2, %v3231_v4 }
  0x1e   :  { %2685 = vmatprep.subr.msk.bf16.mxu0 %vm68_vm0, %v63_v9  ;;  %2815 = vmatprep.subr.bf16.mxu1 %v3174_v20 }
  0x1f   :  { %79 = vmatpush1.bf16.msra.mxu0 %v70_v10 }
  0x20   :  { %211 = vmatprep.subr.bf16.mxu0 %v3238_v11  ;;  %2812 = vmatmul.mubr.msk.bf16.vlgmr.msra.gmra.mrb[0].mxu1 %vm64_vm1, %v3009_v12 }
  0x21   :  { %2817 = vmatprep.mubr.msk.bf16.mxu1 %vm3175_vm3, %v3174_v20 }
  0x22   :  { %2686 = vmatmul.mubr.msk.bf16.vlgmr.msra.gmra.mrb[0].mxu0 %vm64_vm1, %v3009_v12 }
  0x23   :  { %212 = vmatpush1.bf16.msra.mxu0 %v3244_v13  ;;  %243 = vmatprep.mubr.bf16.mxu0 %v3173_v3 }
  0x24   :  { %213 = vmatprep.subr.bf16.mxu0 %v3247_v14 }
  0x27   :  { %214 = vmatpush1.bf16.msra.mxu0 %v3251_v15 }
  0x28   :  { %2821 = vmatprep.subr.bf16.mxu0 %v3174_v20 }
  0x2a   :  { %2692 = vmatmul.mubr.msk.bf16.vlgmr.msra.gmra.mrb[4].mxu0 %vm207_vm2, %v186_v17 }
  0x2b   :  { %2823 = vmatprep.mubr.msk.bf16.mxu0 %vm3175_vm3, %v3174_v20 }
  0xf3   :  { %v3305_v58 = vpop.f32.mrb[0].mxu1 }
  0xf4   :  { %v2813_v59 = vpop.f32.mrb[1].mxu1 }
  0xf5   :  { %v112_v22 = vpop.f32.mrb[0].mxu0  ;;  %v3307_v60 = vpop.f32.mrb[2].mxu1 }
  0xf6   :  { %v162_v23 = vpack.c.bf16 %v112_v22, %v112_v22  ;;  %v3271_v24 = vpop.f32.mrb[1].mxu0  ;;  %v2814_v61 = vpop.f32.mrb[3].mxu1 }
  0xf7   :  { %v116_v25 = vpop.f32.mrb[2].mxu0 }
  0xf8   :  { %v3275_v27 = vsel %vm291_vm4, %v162_v23, 0  ;;  %v163_v28 = vpack.c.bf16 %v116_v25, %v116_v25  ;;  %v3277_v29 = vpop.f32.mrb[3].mxu0  ;;  %v3316_v25 = vsub.s32 0, %v3231_v4 }
  0xf9   :  { %2816 = vmatpush3.bf16.msra.mxu1 %v3275_v27 }
  0xfa   :  { %v3286_v31 = vsel %vm291_vm4, %v163_v28, 0  ;;  %2827 = vmatprep.subr.bf16.mxu1 %v3174_v20  ;;  %v3384_v59 = vrot.slane %v3282_v30, %v3316_v25 }
  0xfb   :  { %2822 = vmatpush3.bf16.msra.mxu0 %v3286_v31 }
  0xfc   :  { %2833 = vmatprep.subr.bf16.mxu0 %v3174_v20 }
  0xfd   :  { %v3294_v33 = vpop.f32.mrb[4].mxu0 }
  0xfe   :  { %v247_v34 = vpop.f32.mrb[5].mxu0 }
  0xff   :  { %v248_v35 = vadd.f32 %v247_v34, %v3291_v32  ;;  %v249_v36 = vpop.f32.mrb[6].mxu0 }
 0x100   :  { %v250_v37 = vpop.f32.mrb[7].mxu0 }
 0x101   :  { %v394_v38 = vsel %vm393_vm5, %v248_v35, -inf  ;;  %v540_v39 = vsel %vm539_vm6, %v248_v35, -inf  ;;  %v253_v40 = vsel %vm252_vm7, %v248_v35, -inf }
 0x102   :  { %395 = vmax.xlane.f32.xlu0 %v394_v38 }
 0x106   :  { %541 = vmax.xlane.f32.xlu0 %v540_v39 }
 0x10a   :  { %254 = vmax.xlane.f32.xlu0 %v253_v40 }
 0x18f   :  { %v396_v41 = vpop.xlane.xlu0 %395 }
 0x190   :  { %v397_v42 = vsub.f32 %v248_v35, %v396_v41  ;;  %v164_v41 = vpack.c.bf16 %v3271_v24, %v3271_v24 }
 0x192   :  { %v398_v43 = vmul.f32 1.442695, %v397_v42  ;;  %v3333_v24 = vsel %vm291_vm4, %v164_v41, 0 }
 0x193   :  { %v542_v44 = vpop.xlane.xlu0 %541 }
 0x194   :  { %3017 = vpow2.f32 %v398_v43  ;;  %v543_v45 = vsub.f32 %v248_v35, %v542_v44 }
 0x196   :  { %v544_v46 = vmul.f32 1.442695, %v543_v45 }
 0x197   :  { %v255_v49 = vpop.xlane.xlu0 %254 }
 0x198   :  { %3019 = vpow2.f32 %v544_v46  ;;  %v256_v50 = vsub.f32 %v248_v35, %v255_v49  ;;  %v165_v46 = vpack.c.bf16 %v3277_v29, %v3277_v29 }
 0x19a   :  { %v257_v51 = vmul.f32 1.442695, %v256_v50  ;;  %v3342_v29 = vsel %vm291_vm4, %v165_v46, 0 }
 0x19c   :  { %3021 = vpow2.f32 %v257_v51  ;;  %v167_v51 = vpack.c.bf16 %v3307_v60, %v3307_v60 }
 0x19e   :  { %v3018_v47 = vpop.eup %3017 }
 0x19f   :  { %401 = vrot.lane.b32.xlu1 %v3018_v47, %s3176_s5 }
 0x1a2   :  { %v3020_v48 = vpop.eup %3019 }
 0x1a3   :  { %547 = vrot.lane.b32.xlu1 %v3020_v48, %s3177_s15 }
 0x1a6   :  { %v3022_v56 = vpop.eup %3021 }
 0x1a7   :  { %v259_v57 = vsel %vm252_vm7, %v3022_v56, 0.0 }
 0x211   :  { %v402_v52 = vpop.permute.xlu1 %401 }
 0x212   :  { %v404_v53 = vsel %vm252_vm7, %v402_v52, 0.0  ;;  %v166_v52 = vpack.c.bf16 %v3305_v58, %v3305_v58 }
 0x213   :  { %405 = vadd.xlane.f32.xlu1 %v404_v53  ;;  %v3356_v53 = vsel %vm291_vm4, %v167_v51, 0 }
 0x215   :  { %v548_v54 = vpop.permute.xlu1 %547 }
 0x216   :  { %v550_v55 = vsel %vm252_vm7, %v548_v54, 0.0 }
 0x217   :  { %551 = vadd.xlane.f32.xlu0 %v550_v55  ;;  %v3363_v55 = vsel %vm291_vm4, %v166_v52, 0 }
 0x21b   :  { %260 = vadd.xlane.f32.xlu0 %v259_v57 }
 0x2a0   :  { %v406_v62 = vpop.xlane.xlu1 %405 }
 0x2a1   :  { %3023 = vrcp.f32 %v406_v62 }
 0x2a4   :  { %v552_v1 = vpop.xlane.xlu0 %551 }
 0x2a5   :  { %3025 = vrcp.f32 %v552_v1 }
 0x2a8   :  { %v261_v5 = vpop.xlane.xlu0 %260 }
 0x2a9   :  { %3027 = vrcp.f32 %v261_v5  ;;  %v246_v5 = vadd.f32 %v3294_v33, %v3384_v59 }
 0x2ab   :  { %v3024_v6 = vpop.eup %3023 }
 0x2ac   :  { %v408_v8 = vmul.f32 %v3024_v6, %v3018_v47 }
 0x2ae   :  { %v409_v9 = vpack.c.bf16 %v408_v8, %v408_v8 }
 0x2af   :  { %v3026_v10 = vpop.eup %3025 }
 0x2b0   :  { %v554_v12 = vmul.f32 %v3026_v10, %v3020_v48  ;;  %v417_v16 = vrot.slane %v409_v9, %v3310_v7 }
 0x2b2   :  { %v555_v17 = vpack.c.bf16 %v554_v12, %v554_v12  ;;  %v424_v18 = vrot.slane %v417_v16, %v3310_v7 }
 0x2b3   :  { %v3028_v19 = vpop.eup %3027 }
 0x2b4   :  { %v263_v21 = vmul.f32 %v3028_v19, %v3022_v56  ;;  %v426_v22 = vunpack.i.h.s16 %v424_v18  ;;  %v563_v23 = vrot.slane %v555_v17, %v3310_v7  ;;  %v2696_v35 = vpack.i.b16 %v424_v18, %v424_v18 }
 0x2b6   :  { %v264_v26 = vpack.c.bf16 %v263_v21, %v263_v21  ;;  %v480_v28 = vpack.i.b16 %v426_v22, %v426_v22  ;;  %v570_v34 = vrot.slane %v563_v23, %v3310_v7  ;;  %v431_v4 = vrot.slane %v2696_v35, %v3316_v25 }
 0x2b8   :  { %v272_v36 = vrot.slane %v264_v26, %v3310_v7  ;;  %v484_v37 = vrot.slane %v480_v28, %v3316_v25  ;;  %v572_v38 = vunpack.i.h.s16 %v570_v34  ;;  %v2699_v44 = vpack.i.b16 %v570_v34, %v570_v34 }
 0x2ba   :  { %485 = vrot.lane.b32.xlu0 %v484_v37, %s3176_s5  ;;  %v626_v39 = vpack.i.b16 %v572_v38, %v572_v38  ;;  %v279_v40 = vrot.slane %v272_v36, %v3310_v7  ;;  %v577_v49 = vrot.slane %v2699_v44, %v3316_v25  ;;  %v185_v44 = vld [vmem:[%s3733_s2] sm:$0x3]  ;;  %s3181_s2 = smov [#allocation5]  }
 0x2bb   :  { %s2672_s20 = sshll.u32 %s3181_s2, 4  ;;  %s2673_s20 = int_to_ptr.vmem [resolvable:$true] %s2672_s20 }
 0x2bc   :  { %v630_v42 = vrot.slane %v626_v39, %v3316_v25  ;;  %v2693_v43 = vpack.i.b16 %v279_v40, %v279_v40  ;;  %v281_v45 = vunpack.i.h.s16 %v279_v40  ;;  %s3143_s21 = scalar_lea.vmem %s2673_s20, 160  ;;  %p3148_p9 = scmp.lt.s32.totalorder %s2673_s20, %s2673_s20 }
 0x2bd   :  { %p3144_p8 = scmp.ne.s32.totalorder %s2673_s20, %s3143_s21  ;;  %p3149_p10 = scmp.lt.s32.totalorder %s3143_s21, %s3143_s21 }
 0x2be   :  { %432 = vrot.lane.b32.xlu0 %v431_v4, %s3176_s5  ;;  %631 = vrot.lane.b32.xlu1 %v630_v42, %s3177_s15  ;;  %v286_v47 = vrot.slane %v2693_v43, %v3316_v25  ;;  %v335_v48 = vpack.i.b16 %v281_v45, %v281_v45 }
 0x2bf   :  { %p3150_p11 = por %p3149_p10, %p3148_p9 }
 0x2c0   :  { %2818 = vmatmul.mubr.msk.bf16.vlgmr.msra.gmra.mrb[4].mxu1 %vm287_vm8, %v286_v47  ;;  %v339_v50 = vrot.slane %v335_v48, %v3316_v25 }
 0x2c1   :  { %2828 = vmatpush3.bf16.msra.mxu1 %v3333_v24  ;;  %2829 = vmatprep.mubr.msk.bf16.mxu1 %vm3175_vm3, %v3174_v20  ;;  %p3151_p12 = pnand %p3150_p11, %p3144_p8 }
 0x2c2   :  { %578 = vrot.lane.b32.xlu0 %v577_v49, %s3177_s15  ;;  %2824 = vmatmul.mubr.msk.bf16.vlgmr.msra.gmra.mrb[8].mxu0 %vm287_vm8, %v339_v50 }
 0x2c3   :  { %2834 = vmatpush3.bf16.msra.mxu0 %v3342_v29  ;;  %2835 = vmatprep.mubr.msk.bf16.mxu0 %vm3175_vm3, %v3174_v20 }
 0x2c4   :  { %2845 = vmatprep.subr.bf16.mxu0 %v3174_v20  ;;  %2839 = vmatprep.subr.bf16.mxu1 %v3174_v20 }
 0x32c   :  { %v486_v54 = vpop.permute.xlu0 %485 }
 0x32d   :  { %2836 = vmatmul.mubr.msk.bf16.vlgmr.msra.gmra.mrb[12].mxu0 %vm287_vm8, %v486_v54 }
 0x32e   :  { %2846 = vmatpush3.bf16.msra.mxu0 %v3356_v53  ;;  %2847 = vmatprep.mubr.msk.bf16.mxu0 %vm3175_vm3, %v3174_v20 }
 0x32f   :  { %2851 = vmatprep.subr.bf16.mxu0 %v3174_v20 }
 0x330   :  { %v433_v56 = vpop.permute.xlu0 %432  ;;  %v632_v57 = vpop.permute.xlu1 %631 }
 0x331   :  { %2830 = vmatmul.mubr.msk.bf16.vlgmr.msra.gmra.mrb[8].mxu1 %vm287_vm8, %v433_v56 }
 0x332   :  { %2840 = vmatpush3.bf16.msra.mxu1 %v3363_v55  ;;  %2841 = vmatprep.mubr.msk.bf16.mxu1 %vm3175_vm3, %v3174_v20 }
 0x333   :  { %726 = vmatprep.subr.bf16.mxu1 %v3238_v11 }
 0x334   :  { %v579_v58 = vpop.permute.xlu0 %578 }
 0x335   :  { %2848 = vmatmul.mubr.msk.bf16.vlgmr.msra.gmra.mrb[16].mxu0 %vm287_vm8, %v632_v57 }
 0x336   :  { %2852 = vmatpush3.bf16.msra.mxu0 %v3275_v27  ;;  %2853 = vmatprep.mubr.msk.bf16.mxu0 %vm3175_vm3, %v3174_v20 }
 0x337   :  { %2863 = vmatprep.subr.bf16.mxu0 %v3174_v20 }
 0x339   :  { %2842 = vmatmul.mubr.msk.bf16.vlgmr.msra.gmra.mrb[12].mxu1 %vm287_vm8, %v579_v58 }
 0x33a   :  { %727 = vmatpush1.bf16.msra.mxu1 %v3244_v13  ;;  %758 = vmatprep.mubr.bf16.mxu1 %v3173_v3 }
 0x33b   :  { %728 = vmatprep.subr.bf16.mxu1 %v3247_v14 }
 0x33e   :  { %729 = vmatpush1.bf16.msra.mxu1 %v3251_v15 }
 0x33f   :  { %2857 = vmatprep.subr.bf16.mxu1 %v3174_v20 }
 0x393   :  { %v329_v60 = vpop.f32.mrb[4].mxu1 }
 0x394   :  { %v2819_v61 = vpop.f32.mrb[5].mxu1 }
 0x395   :  { %v332_v62 = vpop.f32.mrb[6].mxu1  ;;  %v380_v63 = vpop.f32.mrb[8].mxu0 }
 0x396   :  { %v388_v0 = vrot.slane %v380_v63, 7  ;;  %v2820_v1 = vpop.f32.mrb[7].mxu1  ;;  %v2825_v2 = vpop.f32.mrb[9].mxu0 }
 0x397   :  { %v383_v6 = vpop.f32.mrb[10].mxu0 }
 0x398   :  { %v390_v8 = vsel %vm389_vm9, %v388_v0, %v329_v60  ;;  %v2826_v9 = vpop.f32.mrb[11].mxu0 }
 0x399   :  { %v392_v10 = vadd.f32 %v390_v8, %v246_v5 }
 0x400   :  { %v527_v12 = vpop.f32.mrb[12].mxu0 }
 0x401   :  { %v2837_v16 = vpop.f32.mrb[13].mxu0  ;;  %v535_v17 = vrot.slane %v527_v12, 7 }
 0x402   :  { %v530_v30 = vpop.f32.mrb[14].mxu0 }
 0x403   :  { %v2838_v18 = vpop.f32.mrb[15].mxu0 }
 0x404   :  { %v474_v19 = vpop.f32.mrb[8].mxu1 }
 0x405   :  { %v536_v21 = vsel %vm389_vm9, %v535_v17, %v474_v19  ;;  %v2831_v22 = vpop.f32.mrb[9].mxu1 }
 0x406   :  { %v538_v23 = vadd.f32 %v536_v21, %v392_v10  ;;  %v477_v26 = vpop.f32.mrb[10].mxu1 }
 0x407   :  { %v2832_v28 = vpop.f32.mrb[11].mxu1 }
 0x408   :  { %v673_v34 = vpop.f32.mrb[16].mxu0 }
 0x409   :  { %v2849_v35 = vpop.f32.mrb[17].mxu0  ;;  %v681_v36 = vrot.slane %v673_v34, 7 }
 0x40a   :  { %v676_v33 = vpop.f32.mrb[18].mxu0 }
 0x40b   :  { %v2850_v37 = vpop.f32.mrb[19].mxu0 }
 0x40c   :  { %v620_v38 = vpop.f32.mrb[12].mxu1 }
 0x40d   :  { %v682_v39 = vsel %vm389_vm9, %v681_v36, %v620_v38  ;;  %v2843_v40 = vpop.f32.mrb[13].mxu1 }
 0x40e   :  { %v684_v41 = vadd.f32 %v682_v39, %v538_v23  ;;  %v623_v4 = vpop.f32.mrb[14].mxu1 }
 0x40f   :  { %v2844_v42 = vpop.f32.mrb[15].mxu1 }
 0x410   :  { %3029 = vtanh.f32 %v684_v41  ;;  %v2702_v45 = vmul.f32 -1.442695, %v684_v41 }
 0x412   :  { %3031 = vpow2.f32 %v2702_v45 }
 0x41a   :  { %v3030_v43 = vpop.eup %3029 }
 0x41b   :  { %698 = vrot.lane.b32.xlu0 %v3030_v43, %s3179_s16 }
 0x41c   :  { %v3032_v46 = vpop.eup %3031 }
 0x41d   :  { %v688_v47 = vadd.f32 1.0, %v3032_v46 }
 0x41f   :  { %693 = vrot.lane.b32.xlu0 %v185_v44, %s3180_s19  ;;  %3033 = vrcp.f32 %v688_v47 }
 0x429   :  { %v3034_v48 = vpop.eup %3033 }
 0x48d   :  { %v699_v49 = vpop.permute.xlu0 %698 }
 0x48e   :  { %v701_v50 = vmul.f32 %v3034_v48, %v699_v49 }
 0x490   :  { %703 = vrot.lane.b32.xlu0 %v701_v50, %s3180_s19 }
 0x491   :  { %v694_v51 = vpop.permute.xlu0 %693 }
 0x492   :  { %v696_v52 = vmul.f32 %v3034_v48, %v694_v51 }
 0x502   :  { %v704_v54 = vpop.permute.xlu0 %703 }
 0x503   :  { %v3397_v56 = vadd.f32 %v704_v54, %v696_v52 }
 0x505   :  { %3035 = vtanh.f32 %v3397_v56 }
 0x50f   :  { %v3036_v57 = vpop.eup %3035 }
 0x510   :  { %709 = vrot.lane.b32.xlu1 %v3036_v57, %s3179_s16 }
 0x582   :  { %v710_v58 = vpop.permute.xlu1 %709 }
 0x583   :  { %v3401_v60 = vmul.f32 %v3034_v48, %v710_v58 }
 0x585   :  { %v719_v61 = vpack.c.bf16 %v3401_v60, %v3401_v60 }
 0x587   :  { %721 = vrot.lane.b32.xlu0 %v719_v61, %s3180_s19 }
 0x5f9   :  { %v722_v62 = vpop.permute.xlu0 %721 }
 0x5fa   :  { %2703 = vmatmul.mubr.msk.bf16.vlgmr.msra.gmra.mrb[16].mxu1 %vm207_vm2, %v722_v62 }
 0x5fb   :  { %2858 = vmatpush3.bf16.msra.mxu1 %v3286_v31  ;;  %2859 = vmatprep.mubr.msk.bf16.mxu1 %vm3175_vm3, %v3174_v20 }
 0x5fc   :  { %2869 = vmatprep.subr.bf16.mxu1 %v3174_v20 }
 0x6cd   :  { %v3411_v63 = vpop.f32.mrb[16].mxu1 }
 0x6ce   :  { %v762_v0 = vpop.f32.mrb[17].mxu1 }
 0x6cf   :  { %v763_v1 = vadd.f32 %v762_v0, %v3291_v32  ;;  %v764_v2 = vpop.f32.mrb[18].mxu1 }
 0x6d0   :  { %v765_v5 = vpop.f32.mrb[19].mxu1 }
 0x6d1   :  { %v1037_v6 = vsel %vm539_vm6, %v763_v1, -inf  ;;  %v898_v8 = vsel %vm393_vm5, %v763_v1, -inf  ;;  %v767_v21 = vsel %vm252_vm7, %v763_v1, -inf }
 0x6d2   :  { %1038 = vmax.xlane.f32.xlu0 %v1037_v6  ;;  %899 = vmax.xlane.f32.xlu1 %v898_v8 }
 0x75f   :  { %v1039_v9 = vpop.xlane.xlu0 %1038  ;;  %v900_v10 = vpop.xlane.xlu1 %899 }
 0x760   :  { %v1040_v12 = vsub.f32 %v763_v1, %v1039_v9  ;;  %v901_v16 = vsub.f32 %v763_v1, %v900_v10 }
 0x762   :  { %v1041_v30 = vmul.f32 1.442695, %v1040_v12  ;;  %v902_v17 = vmul.f32 1.442695, %v901_v16 }
 0x764   :  { %3037 = vpow2.f32 %v1041_v30 }
 0x765   :  { %3039 = vpow2.f32 %v902_v17 }
 0x76e   :  { %v3038_v18 = vpop.eup %3037 }
 0x76f   :  { %v3040_v19 = vpop.eup %3039  ;;  %1044 = vrot.lane.b32.xlu1 %v3038_v18, %s3177_s15 }
 0x770   :  { %905 = vrot.lane.b32.xlu0 %v3040_v19, %s3176_s5 }
 0x793   :  { %768 = vmax.xlane.f32.xlu1 %v767_v21 }
 0x7e1   :  { %v1045_v26 = vpop.permute.xlu1 %1044 }
 0x7e2   :  { %v906_v22 = vpop.permute.xlu0 %905  ;;  %v1047_v28 = vsel %vm252_vm7, %v1045_v26, 0.0 }
 0x7e3   :  { %v908_v23 = vsel %vm252_vm7, %v906_v22, 0.0 }
 0x7e4   :  { %909 = vadd.xlane.f32.xlu0 %v908_v23 }
 0x7e8   :  { %1048 = vadd.xlane.f32.xlu0 %v1047_v28 }
 0x820   :  { %v769_v34 = vpop.xlane.xlu1 %768 }
 0x821   :  { %v770_v35 = vsub.f32 %v763_v1, %v769_v34 }
 0x823   :  { %v771_v33 = vmul.f32 1.442695, %v770_v35 }
 0x825   :  { %3041 = vpow2.f32 %v771_v33 }
 0x82f   :  { %v3042_v36 = vpop.eup %3041 }
 0x830   :  { %v773_v37 = vsel %vm252_vm7, %v3042_v36, 0.0 }
 0x831   :  { %774 = vadd.xlane.f32.xlu0 %v773_v37  ;;  %v761_v37 = vadd.f32 %v3411_v63, %v3384_v59 }
 0x871   :  { %v910_v38 = vpop.xlane.xlu0 %909 }
 0x872   :  { %3043 = vrcp.f32 %v910_v38 }
 0x875   :  { %v1049_v39 = vpop.xlane.xlu0 %1048 }
 0x876   :  { %3045 = vrcp.f32 %v1049_v39 }
 0x87c   :  { %v3044_v40 = vpop.eup %3043 }
 0x87d   :  { %v912_v41 = vmul.f32 %v3044_v40, %v3040_v19 }
 0x87f   :  { %v913_v4 = vpack.c.bf16 %v912_v41, %v912_v41 }
 0x880   :  { %v3046_v42 = vpop.eup %3045 }
 0x881   :  { %v1051_v43 = vmul.f32 %v3046_v42, %v3038_v18  ;;  %v921_v44 = vrot.slane %v913_v4, %v3310_v7 }
 0x883   :  { %v1052_v45 = vpack.c.bf16 %v1051_v43, %v1051_v43  ;;  %v928_v46 = vrot.slane %v921_v44, %v3310_v7 }
 0x885   :  { %v2707_v47 = vpack.i.b16 %v928_v46, %v928_v46  ;;  %v930_v48 = vunpack.i.h.s16 %v928_v46  ;;  %v1060_v49 = vrot.slane %v1052_v45, %v3310_v7 }
 0x887   :  { %v935_v50 = vrot.slane %v2707_v47, %v3316_v25  ;;  %v981_v51 = vpack.i.b16 %v930_v48, %v930_v48  ;;  %v1067_v52 = vrot.slane %v1060_v49, %v3310_v7 }
 0x889   :  { %936 = vrot.lane.b32.xlu0 %v935_v50, %s3176_s5  ;;  %v985_v54 = vrot.slane %v981_v51, %v3316_v25  ;;  %v1069_v57 = vunpack.i.h.s16 %v1067_v52  ;;  %v2710_v62 = vpack.i.b16 %v1067_v52, %v1067_v52 }
 0x88b   :  { %986 = vrot.lane.b32.xlu1 %v985_v54, %s3176_s5  ;;  %v1120_v58 = vpack.i.b16 %v1069_v57, %v1069_v57  ;;  %v1074_v0 = vrot.slane %v2710_v62, %v3316_v25 }
 0x88d   :  { %v1124_v61 = vrot.slane %v1120_v58, %v3316_v25 }
 0x88f   :  { %1125 = vrot.lane.b32.xlu1 %v1124_v61, %s3177_s15 }
 0x893   :  { %1075 = vrot.lane.b32.xlu1 %v1074_v0, %s3177_s15 }
 0x8be   :  { %v775_v1 = vpop.xlane.xlu0 %774 }
 0x8bf   :  { %3047 = vrcp.f32 %v775_v1 }
 0x8c9   :  { %v3048_v2 = vpop.eup %3047 }
 0x8ca   :  { %v777_v5 = vmul.f32 %v3048_v2, %v3042_v36 }
 0x8cc   :  { %v778_v6 = vpack.c.bf16 %v777_v5, %v777_v5 }
 0x8ce   :  { %v786_v8 = vrot.slane %v778_v6, %v3310_v7 }
 0x8d0   :  { %v793_v9 = vrot.slane %v786_v8, %v3310_v7 }
 0x8d2   :  { %v2704_v10 = vpack.i.b16 %v793_v9, %v793_v9  ;;  %v795_v12 = vunpack.i.h.s16 %v793_v9 }
 0x8d4   :  { %v800_v16 = vrot.slane %v2704_v10, %v3316_v25  ;;  %v844_v30 = vpack.i.b16 %v795_v12, %v795_v12 }
 0x8d6   :  { %2854 = vmatmul.mubr.msk.bf16.vlgmr.msra.gmra.mrb[20].mxu0 %vm287_vm8, %v800_v16  ;;  %v848_v17 = vrot.slane %v844_v30, %v3316_v25 }
 0x8d7   :  { %2864 = vmatpush3.bf16.msra.mxu0 %v3333_v24  ;;  %2865 = vmatprep.mubr.msk.bf16.mxu0 %vm3175_vm3, %v3174_v20 }
 0x8d8   :  { %2860 = vmatmul.mubr.msk.bf16.vlgmr.msra.gmra.mrb[20].mxu1 %vm287_vm8, %v848_v17  ;;  %2875 = vmatprep.subr.bf16.mxu0 %v3174_v20 }
 0x8d9   :  { %2870 = vmatpush3.bf16.msra.mxu1 %v3342_v29  ;;  %2871 = vmatprep.mubr.msk.bf16.mxu1 %vm3175_vm3, %v3174_v20 }
 0x8da   :  { %2881 = vmatprep.subr.bf16.mxu1 %v3174_v20 }
 0x8fb   :  { %v937_v18 = vpop.permute.xlu0 %936 }
 0x8fc   :  { %2866 = vmatmul.mubr.msk.bf16.vlgmr.msra.gmra.mrb[24].mxu0 %vm287_vm8, %v937_v18 }
 0x8fd   :  { %2876 = vmatpush3.bf16.msra.mxu0 %v3363_v55  ;;  %v987_v19 = vpop.permute.xlu1 %986  ;;  %2877 = vmatprep.mubr.msk.bf16.mxu0 %vm3175_vm3, %v3174_v20 }
 0x8fe   :  { %2872 = vmatmul.mubr.msk.bf16.vlgmr.msra.gmra.mrb[24].mxu1 %vm287_vm8, %v987_v19  ;;  %1213 = vmatprep.subr.bf16.mxu0 %v3238_v11 }
 0x8ff   :  { %2882 = vmatpush3.bf16.msra.mxu1 %v3356_v53  ;;  %2883 = vmatprep.mubr.msk.bf16.mxu1 %vm3175_vm3, %v3174_v20 }
 0x900   :  { %2887 = vmatprep.subr.bf16.mxu1 %v3174_v20 }
 0x901   :  { %v1126_v21 = vpop.permute.xlu1 %1125 }
 0x905   :  { %v1076_v22 = vpop.permute.xlu1 %1075 }
 0x906   :  { %2878 = vmatmul.mubr.msk.bf16.vlgmr.msra.gmra.mrb[28].mxu0 %vm287_vm8, %v1076_v22  ;;  %2884 = vmatmul.mubr.msk.bf16.vlgmr.msra.gmra.mrb[28].mxu1 %vm287_vm8, %v1126_v21 }
 0x907   :  { %2888 = vmatpush3.bf16.msra.mxu1 %v3275_v27  ;;  %1214 = vmatpush1.bf16.msra.mxu0 %v3244_v13 }
 0x908   :  { %1215 = vmatprep.subr.bf16.mxu0 %v3247_v14  ;;  %1245 = vmatprep.mubr.bf16.mxu0 %v3173_v3 }
 0x909   :  { %2889 = vmatprep.mubr.msk.bf16.mxu1 %vm3175_vm3, %v3174_v20  ;;  %2899 = vmatprep.subr.bf16.mxu1 %v3174_v20 }
 0x90b   :  { %1216 = vmatpush1.bf16.msra.mxu0 %v3251_v15 }
 0x90c   :  { %2893 = vmatprep.subr.bf16.mxu0 %v3174_v20 }
 0x9a9   :  { %v838_v23 = vpop.f32.mrb[20].mxu0 }
 0x9aa   :  { %v2855_v26 = vpop.f32.mrb[21].mxu0 }
 0x9ab   :  { %v841_v28 = vpop.f32.mrb[22].mxu0  ;;  %v886_v34 = vpop.f32.mrb[20].mxu1 }
 0x9ac   :  { %v894_v35 = vrot.slane %v886_v34, 7  ;;  %v2856_v33 = vpop.f32.mrb[23].mxu0  ;;  %v2861_v36 = vpop.f32.mrb[21].mxu1 }
 0x9ad   :  { %v889_v38 = vpop.f32.mrb[22].mxu1 }
 0x9ae   :  { %v895_v39 = vsel %vm389_vm9, %v894_v35, %v838_v23  ;;  %v2862_v40 = vpop.f32.mrb[23].mxu1 }
 0x9af   :  { %v897_v41 = vadd.f32 %v895_v39, %v761_v37 }
 0x9cf   :  { %v975_v4 = vpop.f32.mrb[24].mxu0 }
 0x9d0   :  { %v2867_v42 = vpop.f32.mrb[25].mxu0 }
 0x9d1   :  { %v978_v43 = vpop.f32.mrb[26].mxu0  ;;  %v1025_v44 = vpop.f32.mrb[24].mxu1 }
 0x9d2   :  { %v1033_v45 = vrot.slane %v1025_v44, 7  ;;  %v2868_v46 = vpop.f32.mrb[27].mxu0  ;;  %v2873_v47 = vpop.f32.mrb[25].mxu1 }
 0x9d3   :  { %v1028_v48 = vpop.f32.mrb[26].mxu1 }
 0x9d4   :  { %v1034_v49 = vsel %vm389_vm9, %v1033_v45, %v975_v4  ;;  %v2874_v50 = vpop.f32.mrb[27].mxu1 }
 0x9d5   :  { %v1036_v51 = vadd.f32 %v1034_v49, %v897_v41 }
 0x9d9   :  { %v1114_v52 = vpop.f32.mrb[28].mxu0  ;;  %v1164_v54 = vpop.f32.mrb[28].mxu1 }
 0x9da   :  { %v1172_v63 = vrot.slane %v1164_v54, 7  ;;  %v2879_v57 = vpop.f32.mrb[29].mxu0  ;;  %v2885_v58 = vpop.f32.mrb[29].mxu1 }
 0x9db   :  { %v1117_v61 = vpop.f32.mrb[30].mxu0  ;;  %v1167_v62 = vpop.f32.mrb[30].mxu1 }
 0x9dc   :  { %v1173_v0 = vsel %vm389_vm9, %v1172_v63, %v1114_v52  ;;  %v2880_v1 = vpop.f32.mrb[31].mxu0  ;;  %v2886_v2 = vpop.f32.mrb[31].mxu1 }
 0x9dd   :  { %v1175_v5 = vadd.f32 %v1173_v0, %v1036_v51 }
 0x9df   :  { %3049 = vtanh.f32 %v1175_v5  ;;  %v2713_v8 = vmul.f32 -1.442695, %v1175_v5 }
 0x9e1   :  { %3051 = vpow2.f32 %v2713_v8 }
 0x9e9   :  { %v3050_v6 = vpop.eup %3049 }
 0x9ea   :  { %1185 = vrot.lane.b32.xlu1 %v3050_v6, %s3179_s16 }
 0x9eb   :  { %v3052_v9 = vpop.eup %3051 }
 0x9ec   :  { %v1179_v10 = vadd.f32 1.0, %v3052_v9 }
 0x9ee   :  { %3053 = vrcp.f32 %v1179_v10 }
 0x9f8   :  { %v3054_v12 = vpop.eup %3053 }
 0x9f9   :  { %v1183_v17 = vmul.f32 %v3054_v12, %v3397_v56 }
 0xa5c   :  { %v1186_v16 = vpop.permute.xlu1 %1185 }
 0xa5d   :  { %v1188_v30 = vmul.f32 %v3054_v12, %v1186_v16 }
 0xa5f   :  { %1190 = vrot.lane.b32.xlu0 %v1188_v30, %s3180_s19 }
 0xad1   :  { %v1191_v18 = vpop.permute.xlu0 %1190 }
 0xad2   :  { %v3477_v19 = vadd.f32 %v1191_v18, %v1183_v17 }
 0xad4   :  { %3055 = vtanh.f32 %v3477_v19 }
 0xade   :  { %v3056_v21 = vpop.eup %3055 }
 0xadf   :  { %1196 = vrot.lane.b32.xlu1 %v3056_v21, %s3179_s16 }
 0xb51   :  { %v1197_v22 = vpop.permute.xlu1 %1196 }
 0xb52   :  { %v3481_v23 = vmul.f32 %v3054_v12, %v1197_v22 }
 0xb54   :  { %v1206_v26 = vpack.c.bf16 %v3481_v23, %v3481_v23 }
 0xb56   :  { %1208 = vrot.lane.b32.xlu0 %v1206_v26, %s3180_s19 }
 0xbc8   :  { %v1209_v28 = vpop.permute.xlu0 %1208 }
 0xbc9   :  { %2714 = vmatmul.mubr.msk.bf16.vlgmr.msra.gmra.mrb[32].mxu0 %vm207_vm2, %v1209_v28 }
 0xbca   :  { %2894 = vmatpush3.bf16.msra.mxu0 %v3286_v31  ;;  %2895 = vmatprep.mubr.msk.bf16.mxu0 %vm3175_vm3, %v3174_v20 }
 0xbcb   :  { %2905 = vmatprep.subr.bf16.mxu0 %v3174_v20 }
 0xc9c   :  { %v3491_v56 = vpop.f32.mrb[32].mxu0 }
 0xc9d   :  { %v1249_v34 = vpop.f32.mrb[33].mxu0 }
 0xc9e   :  { %v1250_v35 = vadd.f32 %v1249_v34, %v3291_v32  ;;  %v1251_v33 = vpop.f32.mrb[34].mxu0 }
 0xc9f   :  { %v1252_v36 = vpop.f32.mrb[35].mxu0 }
 0xca0   :  { %v1524_v37 = vsel %vm539_vm6, %v1250_v35, -inf  ;;  %v1385_v38 = vsel %vm393_vm5, %v1250_v35, -inf  ;;  %v1254_v46 = vsel %vm252_vm7, %v1250_v35, -inf }
 0xca1   :  { %1525 = vmax.xlane.f32.xlu0 %v1524_v37  ;;  %1386 = vmax.xlane.f32.xlu1 %v1385_v38 }
 0xd2e   :  { %v1526_v39 = vpop.xlane.xlu0 %1525  ;;  %v1387_v40 = vpop.xlane.xlu1 %1386 }
 0xd2f   :  { %v1527_v41 = vsub.f32 %v1250_v35, %v1526_v39  ;;  %v1388_v4 = vsub.f32 %v1250_v35, %v1387_v40 }
 0xd31   :  { %v1528_v42 = vmul.f32 1.442695, %v1527_v41  ;;  %v1389_v43 = vmul.f32 1.442695, %v1388_v4 }
 0xd33   :  { %3057 = vpow2.f32 %v1528_v42 }
 0xd34   :  { %3059 = vpow2.f32 %v1389_v43 }
 0xd3d   :  { %v3058_v44 = vpop.eup %3057 }
 0xd3e   :  { %v3060_v45 = vpop.eup %3059  ;;  %1531 = vrot.lane.b32.xlu1 %v3058_v44, %s3177_s15 }
 0xd3f   :  { %1392 = vrot.lane.b32.xlu0 %v3060_v45, %s3176_s5 }
 0xd62   :  { %1255 = vmax.xlane.f32.xlu1 %v1254_v46 }
 0xdb0   :  { %v1532_v49 = vpop.permute.xlu1 %1531 }
 0xdb1   :  { %v1393_v47 = vpop.permute.xlu0 %1392  ;;  %v1534_v50 = vsel %vm252_vm7, %v1532_v49, 0.0 }
 0xdb2   :  { %v1395_v48 = vsel %vm252_vm7, %v1393_v47, 0.0 }
 0xdb3   :  { %1396 = vadd.xlane.f32.xlu0 %v1395_v48 }
 0xdb7   :  { %1535 = vadd.xlane.f32.xlu0 %v1534_v50 }
 0xdef   :  { %v1256_v51 = vpop.xlane.xlu1 %1255 }
 0xdf0   :  { %v1257_v52 = vsub.f32 %v1250_v35, %v1256_v51 }
 0xdf2   :  { %v1258_v54 = vmul.f32 1.442695, %v1257_v52 }
 0xdf4   :  { %3061 = vpow2.f32 %v1258_v54 }
 0xdfe   :  { %v3062_v63 = vpop.eup %3061 }
 0xdff   :  { %v1260_v57 = vsel %vm252_vm7, %v3062_v63, 0.0 }
 0xe00   :  { %1261 = vadd.xlane.f32.xlu0 %v1260_v57 }
 0xe40   :  { %v1397_v58 = vpop.xlane.xlu0 %1396 }
 0xe41   :  { %3063 = vrcp.f32 %v1397_v58 }
 0xe44   :  { %v1536_v61 = vpop.xlane.xlu0 %1535 }
 0xe45   :  { %3065 = vrcp.f32 %v1536_v61 }
 0xe4b   :  { %v3064_v62 = vpop.eup %3063 }
 0xe4c   :  { %v1399_v0 = vmul.f32 %v3064_v62, %v3060_v45 }
 0xe4e   :  { %v1400_v1 = vpack.c.bf16 %v1399_v0, %v1399_v0 }
 0xe4f   :  { %v3066_v2 = vpop.eup %3065 }
 0xe50   :  { %v1538_v5 = vmul.f32 %v3066_v2, %v3058_v44  ;;  %v1408_v6 = vrot.slane %v1400_v1, %v3310_v7 }
 0xe52   :  { %v1539_v8 = vpack.c.bf16 %v1538_v5, %v1538_v5  ;;  %v1415_v9 = vrot.slane %v1408_v6, %v3310_v7 }
 0xe54   :  { %v2718_v10 = vpack.i.b16 %v1415_v9, %v1415_v9  ;;  %v1417_v12 = vunpack.i.h.s16 %v1415_v9  ;;  %v1547_v16 = vrot.slane %v1539_v8, %v3310_v7 }
 0xe56   :  { %v1422_v30 = vrot.slane %v2718_v10, %v3316_v25  ;;  %v1468_v17 = vpack.i.b16 %v1417_v12, %v1417_v12  ;;  %v1554_v18 = vrot.slane %v1547_v16, %v3310_v7 }
 0xe58   :  { %1423 = vrot.lane.b32.xlu0 %v1422_v30, %s3176_s5  ;;  %v1472_v21 = vrot.slane %v1468_v17, %v3316_v25  ;;  %v1556_v22 = vunpack.i.h.s16 %v1554_v18  ;;  %v2721_v34 = vpack.i.b16 %v1554_v18, %v1554_v18 }
 0xe5a   :  { %1473 = vrot.lane.b32.xlu1 %v1472_v21, %s3176_s5  ;;  %v1607_v26 = vpack.i.b16 %v1556_v22, %v1556_v22  ;;  %v1561_v35 = vrot.slane %v2721_v34, %v3316_v25 }
 0xe5c   :  { %v1611_v28 = vrot.slane %v1607_v26, %v3316_v25 }
 0xe5e   :  { %1612 = vrot.lane.b32.xlu1 %v1611_v28, %s3177_s15 }
 0xe62   :  { %1562 = vrot.lane.b32.xlu1 %v1561_v35, %s3177_s15 }
 0xe8d   :  { %v1262_v33 = vpop.xlane.xlu0 %1261 }
 0xe8e   :  { %3067 = vrcp.f32 %v1262_v33 }
 0xe98   :  { %v3068_v36 = vpop.eup %3067 }
 0xe99   :  { %v1264_v37 = vmul.f32 %v3068_v36, %v3062_v63 }
 0xe9b   :  { %v1265_v38 = vpack.c.bf16 %v1264_v37, %v1264_v37 }
 0xe9d   :  { %v1273_v39 = vrot.slane %v1265_v38, %v3310_v7 }
 0xe9f   :  { %v1280_v40 = vrot.slane %v1273_v39, %v3310_v7 }
 0xea1   :  { %v2715_v41 = vpack.i.b16 %v1280_v40, %v1280_v40  ;;  %v1282_v4 = vunpack.i.h.s16 %v1280_v40 }
 0xea3   :  { %v1287_v42 = vrot.slane %v2715_v41, %v3316_v25  ;;  %v1331_v43 = vpack.i.b16 %v1282_v4, %v1282_v4 }
 0xea5   :  { %2890 = vmatmul.mubr.msk.bf16.vlgmr.msra.gmra.mrb[32].mxu1 %vm287_vm8, %v1287_v42  ;;  %v1335_v44 = vrot.slane %v1331_v43, %v3316_v25 }
 0xea6   :  { %2900 = vmatpush3.bf16.msra.mxu1 %v3333_v24  ;;  %2901 = vmatprep.mubr.msk.bf16.mxu1 %vm3175_vm3, %v3174_v20 }
 0xea7   :  { %2896 = vmatmul.mubr.msk.bf16.vlgmr.msra.gmra.mrb[36].mxu0 %vm287_vm8, %v1335_v44  ;;  %2911 = vmatprep.subr.bf16.mxu1 %v3174_v20 }
 0xea8   :  { %2906 = vmatpush3.bf16.msra.mxu0 %v3342_v29  ;;  %2907 = vmatprep.mubr.msk.bf16.mxu0 %vm3175_vm3, %v3174_v20 }
 0xea9   :  { %2917 = vmatprep.subr.bf16.mxu0 %v3174_v20 }
 0xeca   :  { %v1424_v45 = vpop.permute.xlu0 %1423 }
 0xecb   :  { %2902 = vmatmul.mubr.msk.bf16.vlgmr.msra.gmra.mrb[36].mxu1 %vm287_vm8, %v1424_v45 }
 0xecc   :  { %2912 = vmatpush3.bf16.msra.mxu1 %v3363_v55  ;;  %v1474_v46 = vpop.permute.xlu1 %1473  ;;  %2913 = vmatprep.mubr.msk.bf16.mxu1 %vm3175_vm3, %v3174_v20 }
 0xecd   :  { %2908 = vmatmul.mubr.msk.bf16.vlgmr.msra.gmra.mrb[40].mxu0 %vm287_vm8, %v1474_v46  ;;  %1700 = vmatprep.subr.bf16.mxu1 %v3238_v11 }
 0xece   :  { %2918 = vmatpush3.bf16.msra.mxu0 %v3356_v53  ;;  %2919 = vmatprep.mubr.msk.bf16.mxu0 %vm3175_vm3, %v3174_v20 }
 0xecf   :  { %2923 = vmatprep.subr.bf16.mxu0 %v3174_v20 }
 0xed0   :  { %v1613_v47 = vpop.permute.xlu1 %1612 }
 0xed4   :  { %v1563_v48 = vpop.permute.xlu1 %1562 }
 0xed5   :  { %2914 = vmatmul.mubr.msk.bf16.vlgmr.msra.gmra.mrb[40].mxu1 %vm287_vm8, %v1563_v48  ;;  %2920 = vmatmul.mubr.msk.bf16.vlgmr.msra.gmra.mrb[44].mxu0 %vm287_vm8, %v1613_v47 }
 0xed6   :  { %2924 = vmatpush3.bf16.msra.mxu0 %v3275_v27  ;;  %1701 = vmatpush1.bf16.msra.mxu1 %v3244_v13 }
 0xed7   :  { %1702 = vmatprep.subr.bf16.mxu1 %v3247_v14  ;;  %1732 = vmatprep.mubr.bf16.mxu1 %v3173_v3  ;;  %v1248_v14 = vadd.f32 %v3491_v56, %v3384_v59 }
 0xed8   :  { %2925 = vmatprep.mubr.msk.bf16.mxu0 %vm3175_vm3, %v3174_v20  ;;  %2935 = vmatprep.subr.bf16.mxu0 %v3174_v20 }
 0xeda   :  { %1703 = vmatpush1.bf16.msra.mxu1 %v3251_v15 }
 0xedb   :  { %2929 = vmatprep.subr.bf16.mxu1 %v3174_v20 }
 0xf78   :  { %v1325_v11 = vpop.f32.mrb[32].mxu1 }
 0xf79   :  { %v2891_v49 = vpop.f32.mrb[33].mxu1 }
 0xf7a   :  { %v1328_v50 = vpop.f32.mrb[34].mxu1  ;;  %v1373_v51 = vpop.f32.mrb[36].mxu0 }
 0xf7b   :  { %v1381_v52 = vrot.slane %v1373_v51, 7  ;;  %v2892_v54 = vpop.f32.mrb[35].mxu1  ;;  %v2897_v13 = vpop.f32.mrb[37].mxu0 }
 0xf7c   :  { %v1376_v63 = vpop.f32.mrb[38].mxu0 }
 0xf7d   :  { %v1382_v57 = vsel %vm389_vm9, %v1381_v52, %v1325_v11  ;;  %v2898_v58 = vpop.f32.mrb[39].mxu0 }
 0xf7e   :  { %v1384_v61 = vadd.f32 %v1382_v57, %v1248_v14 }
 0xf9e   :  { %v1462_v62 = vpop.f32.mrb[36].mxu1 }
 0xf9f   :  { %v2903_v0 = vpop.f32.mrb[37].mxu1 }
 0xfa0   :  { %v1465_v15 = vpop.f32.mrb[38].mxu1  ;;  %v1512_v1 = vpop.f32.mrb[40].mxu0 }
 0xfa1   :  { %v1520_v2 = vrot.slane %v1512_v1, 7  ;;  %v2904_v5 = vpop.f32.mrb[39].mxu1  ;;  %v2909_v6 = vpop.f32.mrb[41].mxu0 }
 0xfa2   :  { %v1515_v8 = vpop.f32.mrb[42].mxu0 }
 0xfa3   :  { %v1521_v9 = vsel %vm389_vm9, %v1520_v2, %v1462_v62  ;;  %v2910_v10 = vpop.f32.mrb[43].mxu0 }
 0xfa4   :  { %v1523_v12 = vadd.f32 %v1521_v9, %v1384_v61 }
 0xfa8   :  { %v1601_v16 = vpop.f32.mrb[40].mxu1  ;;  %v1651_v30 = vpop.f32.mrb[44].mxu0 }
 0xfa9   :  { %v1659_v56 = vrot.slane %v1651_v30, 7  ;;  %v2915_v17 = vpop.f32.mrb[41].mxu1  ;;  %v2921_v18 = vpop.f32.mrb[45].mxu0 }
 0xfaa   :  { %v1604_v21 = vpop.f32.mrb[42].mxu1  ;;  %v1654_v22 = vpop.f32.mrb[46].mxu0 }
 0xfab   :  { %v1660_v26 = vsel %vm389_vm9, %v1659_v56, %v1601_v16  ;;  %v2916_v28 = vpop.f32.mrb[43].mxu1  ;;  %v2922_v34 = vpop.f32.mrb[47].mxu0 }
 0xfac   :  { %v1662_v35 = vadd.f32 %v1660_v26, %v1523_v12 }
 0xfae   :  { %3069 = vtanh.f32 %v1662_v35  ;;  %v2724_v36 = vmul.f32 -1.442695, %v1662_v35 }
 0xfb0   :  { %3071 = vpow2.f32 %v2724_v36 }
 0xfb8   :  { %v3070_v33 = vpop.eup %3069 }
 0xfb9   :  { %1672 = vrot.lane.b32.xlu1 %v3070_v33, %s3179_s16 }
 0xfba   :  { %v3072_v37 = vpop.eup %3071 }
 0xfbb   :  { %v1666_v38 = vadd.f32 1.0, %v3072_v37 }
 0xfbd   :  { %3073 = vrcp.f32 %v1666_v38 }
 0xfc7   :  { %v3074_v39 = vpop.eup %3073 }
 0xfc8   :  { %v1670_v4 = vmul.f32 %v3074_v39, %v3477_v19 }
0x102b   :  { %v1673_v40 = vpop.permute.xlu1 %1672 }
0x102c   :  { %v1675_v41 = vmul.f32 %v3074_v39, %v1673_v40 }
0x102e   :  { %1677 = vrot.lane.b32.xlu0 %v1675_v41, %s3180_s19 }
0x10a0   :  { %v1678_v42 = vpop.permute.xlu0 %1677 }
0x10a1   :  { %v3557_v43 = vadd.f32 %v1678_v42, %v1670_v4 }
0x10a3   :  { %3075 = vtanh.f32 %v3557_v43 }
0x10ad   :  { %v3076_v44 = vpop.eup %3075 }
0x10ae   :  { %1683 = vrot.lane.b32.xlu1 %v3076_v44, %s3179_s16 }
0x1120   :  { %v1684_v45 = vpop.permute.xlu1 %1683 }
0x1121   :  { %v3561_v46 = vmul.f32 %v3074_v39, %v1684_v45 }
0x1123   :  { %v1693_v47 = vpack.c.bf16 %v3561_v46, %v3561_v46 }
0x1125   :  { %1695 = vrot.lane.b32.xlu0 %v1693_v47, %s3180_s19 }
0x1197   :  { %v1696_v48 = vpop.permute.xlu0 %1695 }
0x1198   :  { %2725 = vmatmul.mubr.msk.bf16.vlgmr.msra.gmra.mrb[44].mxu1 %vm207_vm2, %v1696_v48 }
0x1199   :  { %2930 = vmatpush3.bf16.msra.mxu1 %v3286_v31  ;;  %2931 = vmatprep.mubr.msk.bf16.mxu1 %vm3175_vm3, %v3174_v20 }
0x119a   :  { %2941 = vmatprep.subr.bf16.mxu1 %v3174_v20 }
0x126b   :  { %v3571_v19 = vpop.f32.mrb[44].mxu1 }
0x126c   :  { %v1736_v11 = vpop.f32.mrb[45].mxu1 }
0x126d   :  { %v1737_v49 = vadd.f32 %v1736_v11, %v3291_v32  ;;  %v1738_v50 = vpop.f32.mrb[46].mxu1 }
0x126e   :  { %v1739_v51 = vpop.f32.mrb[47].mxu1 }
0x126f   :  { %v2011_v52 = vsel %vm539_vm6, %v1737_v49, -inf  ;;  %v1872_v54 = vsel %vm393_vm5, %v1737_v49, -inf  ;;  %v1741_v15 = vsel %vm252_vm7, %v1737_v49, -inf }
0x1270   :  { %2012 = vmax.xlane.f32.xlu0 %v2011_v52  ;;  %1873 = vmax.xlane.f32.xlu1 %v1872_v54 }
0x12fd   :  { %v2013_v13 = vpop.xlane.xlu0 %2012  ;;  %v1874_v14 = vpop.xlane.xlu1 %1873 }
0x12fe   :  { %v2014_v63 = vsub.f32 %v1737_v49, %v2013_v13  ;;  %v1875_v57 = vsub.f32 %v1737_v49, %v1874_v14 }
0x1300   :  { %v2015_v58 = vmul.f32 1.442695, %v2014_v63  ;;  %v1876_v61 = vmul.f32 1.442695, %v1875_v57 }
0x1302   :  { %3077 = vpow2.f32 %v2015_v58 }
0x1303   :  { %3079 = vpow2.f32 %v1876_v61 }
0x130c   :  { %v3078_v62 = vpop.eup %3077 }
0x130d   :  { %v3080_v0 = vpop.eup %3079  ;;  %2018 = vrot.lane.b32.xlu1 %v3078_v62, %s3177_s15 }
0x130e   :  { %1879 = vrot.lane.b32.xlu0 %v3080_v0, %s3176_s5 }
0x1331   :  { %1742 = vmax.xlane.f32.xlu1 %v1741_v15 }
0x137f   :  { %v2019_v5 = vpop.permute.xlu1 %2018 }
0x1380   :  { %v1880_v1 = vpop.permute.xlu0 %1879  ;;  %v2021_v6 = vsel %vm252_vm7, %v2019_v5, 0.0  ;;  %v3120_v5 = vld [vmem:[#allocation2 + $0x10] ss:$8 sps:$4 sm:$0xff]  }
0x1381   :  { %v1882_v2 = vsel %vm252_vm7, %v1880_v1, 0.0  ;;  %v3118_v1 = vld [vmem:[#allocation2] ss:$8 sps:$4 sm:$0xff]  }
0x1382   :  { %1883 = vadd.xlane.f32.xlu0 %v1882_v2  ;;  %v3119_v2 = vld [vmem:[#allocation2 + $0x14] ss:$8 sps:$4 sm:$0xff]  }
0x1386   :  { %2022 = vadd.xlane.f32.xlu0 %v2021_v6 }
0x13be   :  { %v1743_v8 = vpop.xlane.xlu1 %1742 }
0x13bf   :  { %v1744_v9 = vsub.f32 %v1737_v49, %v1743_v8 }
0x13c1   :  { %v1745_v10 = vmul.f32 1.442695, %v1744_v9 }
0x13c3   :  { %3081 = vpow2.f32 %v1745_v10 }
0x13cd   :  { %v3082_v12 = vpop.eup %3081 }
0x13ce   :  { %v1747_v16 = vsel %vm252_vm7, %v3082_v12, 0.0 }
0x13cf   :  { %1748 = vadd.xlane.f32.xlu0 %v1747_v16 }
0x140f   :  { %v1884_v30 = vpop.xlane.xlu0 %1883 }
0x1410   :  { %3083 = vrcp.f32 %v1884_v30  ;;  %v1735_v30 = vadd.f32 %v3571_v19, %v3384_v59 }
0x1413   :  { %v2023_v56 = vpop.xlane.xlu0 %2022 }
0x1414   :  { %3085 = vrcp.f32 %v2023_v56 }
0x141a   :  { %v3084_v17 = vpop.eup %3083 }
0x141b   :  { %v1886_v18 = vmul.f32 %v3084_v17, %v3080_v0 }
0x141d   :  { %v1887_v21 = vpack.c.bf16 %v1886_v18, %v1886_v18 }
0x141e   :  { %v3086_v22 = vpop.eup %3085 }
0x141f   :  { %v2025_v26 = vmul.f32 %v3086_v22, %v3078_v62  ;;  %v1895_v28 = vrot.slane %v1887_v21, %v3310_v7  ;;  %v3117_v62 = vld [vmem:[#allocation2 + $0x4] ss:$8 sps:$4 sm:$0xff]  }
0x1421   :  { %v2026_v34 = vpack.c.bf16 %v2025_v26, %v2025_v26  ;;  %v1902_v35 = vrot.slane %v1895_v28, %v3310_v7 }
0x1423   :  { %v2729_v33 = vpack.i.b16 %v1902_v35, %v1902_v35  ;;  %v1904_v36 = vunpack.i.h.s16 %v1902_v35  ;;  %v2034_v37 = vrot.slane %v2026_v34, %v3310_v7 }
0x1425   :  { %v1909_v38 = vrot.slane %v2729_v33, %v3316_v25  ;;  %v1955_v39 = vpack.i.b16 %v1904_v36, %v1904_v36  ;;  %v2041_v40 = vrot.slane %v2034_v37, %v3310_v7 }
0x1427   :  { %1910 = vrot.lane.b32.xlu0 %v1909_v38, %s3176_s5  ;;  %v1959_v41 = vrot.slane %v1955_v39, %v3316_v25  ;;  %v2043_v4 = vunpack.i.h.s16 %v2041_v40  ;;  %v2732_v45 = vpack.i.b16 %v2041_v40, %v2041_v40 }
0x1429   :  { %1960 = vrot.lane.b32.xlu1 %v1959_v41, %s3176_s5  ;;  %v2094_v42 = vpack.i.b16 %v2043_v4, %v2043_v4  ;;  %v2048_v47 = vrot.slane %v2732_v45, %v3316_v25 }
0x142b   :  { %v2098_v44 = vrot.slane %v2094_v42, %v3316_v25 }
0x142d   :  { %2099 = vrot.lane.b32.xlu1 %v2098_v44, %s3177_s15 }
0x1431   :  { %2049 = vrot.lane.b32.xlu1 %v2048_v47, %s3177_s15 }
0x145c   :  { %v1749_v48 = vpop.xlane.xlu0 %1748 }
0x145d   :  { %3087 = vrcp.f32 %v1749_v48 }
0x1467   :  { %v3088_v11 = vpop.eup %3087 }
0x1468   :  { %v1751_v49 = vmul.f32 %v3088_v11, %v3082_v12 }
0x146a   :  { %v1752_v50 = vpack.c.bf16 %v1751_v49, %v1751_v49 }
0x146c   :  { %v1760_v51 = vrot.slane %v1752_v50, %v3310_v7 }
0x146e   :  { %v1767_v52 = vrot.slane %v1760_v51, %v3310_v7 }
0x1470   :  { %v2726_v54 = vpack.i.b16 %v1767_v52, %v1767_v52  ;;  %v1769_v13 = vunpack.i.h.s16 %v1767_v52 }
0x1472   :  { %v1774_v14 = vrot.slane %v2726_v54, %v3316_v25  ;;  %v1818_v63 = vpack.i.b16 %v1769_v13, %v1769_v13 }
0x1474   :  { %2926 = vmatmul.mubr.msk.bf16.vlgmr.msra.gmra.mrb[48].mxu0 %vm287_vm8, %v1774_v14  ;;  %v1822_v57 = vrot.slane %v1818_v63, %v3316_v25 }
0x1475   :  { %2936 = vmatpush3.bf16.msra.mxu0 %v3333_v24  ;;  %2937 = vmatprep.mubr.msk.bf16.mxu0 %vm3175_vm3, %v3174_v20 }
0x1476   :  { %2932 = vmatmul.mubr.msk.bf16.vlgmr.msra.gmra.mrb[48].mxu1 %vm287_vm8, %v1822_v57  ;;  %2947 = vmatprep.subr.bf16.mxu0 %v3174_v20 }
0x1477   :  { %2942 = vmatpush3.bf16.msra.mxu1 %v3342_v29  ;;  %2943 = vmatprep.mubr.msk.bf16.mxu1 %vm3175_vm3, %v3174_v20 }
0x1478   :  { %2953 = vmatprep.subr.bf16.mxu1 %v3174_v20 }
0x1499   :  { %v1911_v58 = vpop.permute.xlu0 %1910 }
0x149a   :  { %2938 = vmatmul.mubr.msk.bf16.vlgmr.msra.gmra.mrb[52].mxu0 %vm287_vm8, %v1911_v58 }
0x149b   :  { %2948 = vmatpush3.bf16.msra.mxu0 %v3363_v55  ;;  %v1961_v61 = vpop.permute.xlu1 %1960  ;;  %2949 = vmatprep.mubr.msk.bf16.mxu0 %vm3175_vm3, %v3174_v20 }
0x149c   :  { %2944 = vmatmul.mubr.msk.bf16.vlgmr.msra.gmra.mrb[52].mxu1 %vm287_vm8, %v1961_v61  ;;  %2187 = vmatprep.subr.bf16.mxu0 %v3117_v62 }
0x149d   :  { %2954 = vmatpush3.bf16.msra.mxu1 %v3356_v53  ;;  %2955 = vmatprep.mubr.msk.bf16.mxu1 %vm3175_vm3, %v3174_v20 }
0x149e   :  { %2959 = vmatprep.subr.bf16.mxu1 %v3174_v20 }
0x149f   :  { %v2100_v0 = vpop.permute.xlu1 %2099 }
0x14a3   :  { %v2050_v15 = vpop.permute.xlu1 %2049 }
0x14a4   :  { %2950 = vmatmul.mubr.msk.bf16.vlgmr.msra.gmra.mrb[56].mxu0 %vm287_vm8, %v2050_v15  ;;  %2956 = vmatmul.mubr.msk.bf16.vlgmr.msra.gmra.mrb[56].mxu1 %vm287_vm8, %v2100_v0 }
0x14a5   :  { %2960 = vmatpush3.bf16.msra.mxu1 %v3275_v27  ;;  %2188 = vmatpush1.bf16.msra.mxu0 %v3118_v1 }
0x14a6   :  { %2189 = vmatprep.subr.bf16.mxu0 %v3119_v2  ;;  %2219 = vmatprep.mubr.bf16.mxu0 %v3173_v3 }
0x14a7   :  { %2961 = vmatprep.mubr.msk.bf16.mxu1 %vm3175_vm3, %v3174_v20  ;;  %2971 = vmatprep.subr.bf16.mxu1 %v3174_v20 }
0x14a9   :  { %2190 = vmatpush1.bf16.msra.mxu0 %v3120_v5 }
0x14aa   :  { %2965 = vmatprep.subr.bf16.mxu0 %v3174_v20 }
0x1547   :  { %v1812_v6 = vpop.f32.mrb[48].mxu0 }
0x1548   :  { %v2927_v8 = vpop.f32.mrb[49].mxu0 }
0x1549   :  { %v1815_v9 = vpop.f32.mrb[50].mxu0  ;;  %v1860_v10 = vpop.f32.mrb[48].mxu1 }
0x154a   :  { %v1868_v27 = vrot.slane %v1860_v10, 7  ;;  %v2928_v12 = vpop.f32.mrb[51].mxu0  ;;  %v2933_v16 = vpop.f32.mrb[49].mxu1 }
0x154b   :  { %v1863_v3 = vpop.f32.mrb[50].mxu1 }
0x154c   :  { %v1869_v56 = vsel %vm389_vm9, %v1868_v27, %v1812_v6  ;;  %v2934_v17 = vpop.f32.mrb[51].mxu1 }
0x154d   :  { %v1871_v18 = vadd.f32 %v1869_v56, %v1735_v30 }
0x156d   :  { %v1949_v21 = vpop.f32.mrb[52].mxu0 }
0x156e   :  { %v2939_v22 = vpop.f32.mrb[53].mxu0 }
0x156f   :  { %v1952_v26 = vpop.f32.mrb[54].mxu0  ;;  %v1999_v28 = vpop.f32.mrb[52].mxu1 }
0x1570   :  { %v2007_v34 = vrot.slane %v1999_v28, 7  ;;  %v2940_v35 = vpop.f32.mrb[55].mxu0  ;;  %v2945_v33 = vpop.f32.mrb[53].mxu1 }
0x1571   :  { %v2002_v36 = vpop.f32.mrb[54].mxu1 }
0x1572   :  { %v2008_v37 = vsel %vm389_vm9, %v2007_v34, %v1949_v21  ;;  %v2946_v38 = vpop.f32.mrb[55].mxu1 }
0x1573   :  { %v2010_v39 = vadd.f32 %v2008_v37, %v1871_v18 }
0x1577   :  { %v2088_v40 = vpop.f32.mrb[56].mxu0  ;;  %v2138_v41 = vpop.f32.mrb[56].mxu1 }
0x1578   :  { %v2146_v19 = vrot.slane %v2138_v41, 7  ;;  %v2951_v4 = vpop.f32.mrb[57].mxu0  ;;  %v2957_v42 = vpop.f32.mrb[57].mxu1 }
0x1579   :  { %v2091_v44 = vpop.f32.mrb[58].mxu0  ;;  %v2141_v45 = vpop.f32.mrb[58].mxu1 }
0x157a   :  { %v2147_v47 = vsel %vm389_vm9, %v2146_v19, %v2088_v40  ;;  %v2952_v48 = vpop.f32.mrb[59].mxu0  ;;  %v2958_v11 = vpop.f32.mrb[59].mxu1 }
0x157b   :  { %v2149_v49 = vadd.f32 %v2147_v47, %v2010_v39 }
0x157d   :  { %3089 = vtanh.f32 %v2149_v49  ;;  %v2735_v51 = vmul.f32 -1.442695, %v2149_v49 }
0x157f   :  { %3091 = vpow2.f32 %v2735_v51 }
0x1587   :  { %v3090_v50 = vpop.eup %3089 }
0x1588   :  { %2159 = vrot.lane.b32.xlu1 %v3090_v50, %s3179_s16 }
0x1589   :  { %v3092_v52 = vpop.eup %3091 }
0x158a   :  { %v2153_v54 = vadd.f32 1.0, %v3092_v52 }
0x158c   :  { %3093 = vrcp.f32 %v2153_v54 }
0x1596   :  { %v3094_v13 = vpop.eup %3093 }
0x1597   :  { %v2157_v57 = vmul.f32 %v3094_v13, %v3557_v43 }
0x15fa   :  { %v2160_v14 = vpop.permute.xlu1 %2159 }
0x15fb   :  { %v2162_v63 = vmul.f32 %v3094_v13, %v2160_v14 }
0x15fd   :  { %2164 = vrot.lane.b32.xlu0 %v2162_v63, %s3180_s19 }
0x166f   :  { %v2165_v58 = vpop.permute.xlu0 %2164 }
0x1670   :  { %v3633_v61 = vadd.f32 %v2165_v58, %v2157_v57 }
0x1672   :  { %3095 = vtanh.f32 %v3633_v61 }
0x167c   :  { %v3096_v62 = vpop.eup %3095 }
0x167d   :  { %2170 = vrot.lane.b32.xlu1 %v3096_v62, %s3179_s16 }
0x16ef   :  { %v2171_v0 = vpop.permute.xlu1 %2170 }
0x16f0   :  { %v3637_v15 = vmul.f32 %v3094_v13, %v2171_v0 }
0x16f2   :  { %v2180_v1 = vpack.c.bf16 %v3637_v15, %v3637_v15 }
0x16f4   :  { %2182 = vrot.lane.b32.xlu0 %v2180_v1, %s3180_s19 }
0x1766   :  { %v2183_v2 = vpop.permute.xlu0 %2182 }
0x1767   :  { %2736 = vmatmul.mubr.msk.bf16.vlgmr.msra.gmra.mrb[60].mxu0 %vm207_vm2, %v2183_v2 }
0x1768   :  { %2966 = vmatpush3.bf16.msra.mxu0 %v3286_v31  ;;  %2967 = vmatprep.mubr.msk.bf16.mxu0 %vm3175_vm3, %v3174_v20 }
0x1769   :  { %2977 = vmatprep.subr.bf16.mxu0 %v3174_v20 }
0x183a   :  { %v3647_v43 = vpop.f32.mrb[60].mxu0 }
0x183b   :  { %v2223_v5 = vpop.f32.mrb[61].mxu0 }
0x183c   :  { %v2224_v6 = vadd.f32 %v2223_v5, %v3291_v32  ;;  %v2225_v8 = vpop.f32.mrb[62].mxu0 }
0x183d   :  { %v2226_v9 = vpop.f32.mrb[63].mxu0 }
0x183e   :  { %v2498_v10 = vsel %vm539_vm6, %v2224_v6, -inf  ;;  %v2359_v27 = vsel %vm393_vm5, %v2224_v6, -inf  ;;  %v2228_v32 = vsel %vm252_vm7, %v2224_v6, -inf }
0x183f   :  { %2499 = vmax.xlane.f32.xlu0 %v2498_v10  ;;  %2360 = vmax.xlane.f32.xlu1 %v2359_v27 }
0x18cc   :  { %v2500_v12 = vpop.xlane.xlu0 %2499  ;;  %v2361_v31 = vpop.xlane.xlu1 %2360 }
0x18cd   :  { %v2501_v16 = vsub.f32 %v2224_v6, %v2500_v12  ;;  %v2362_v30 = vsub.f32 %v2224_v6, %v2361_v31 }
0x18cf   :  { %v2502_v3 = vmul.f32 1.442695, %v2501_v16  ;;  %v2363_v56 = vmul.f32 1.442695, %v2362_v30 }
0x18d1   :  { %3097 = vpow2.f32 %v2502_v3 }
0x18d2   :  { %3099 = vpow2.f32 %v2363_v56 }
0x18db   :  { %v3098_v17 = vpop.eup %3097 }
0x18dc   :  { %v3100_v18 = vpop.eup %3099  ;;  %2505 = vrot.lane.b32.xlu1 %v3098_v17, %s3177_s15 }
0x18dd   :  { %2366 = vrot.lane.b32.xlu0 %v3100_v18, %s3176_s5 }
0x1900   :  { %2229 = vmax.xlane.f32.xlu1 %v2228_v32 }
0x194e   :  { %v2506_v26 = vpop.permute.xlu1 %2505 }
0x194f   :  { %v2367_v21 = vpop.permute.xlu0 %2366  ;;  %v2508_v28 = vsel %vm252_vm7, %v2506_v26, 0.0 }
0x1950   :  { %v2369_v22 = vsel %vm252_vm7, %v2367_v21, 0.0 }
0x1951   :  { %2370 = vadd.xlane.f32.xlu0 %v2369_v22 }
0x1955   :  { %2509 = vadd.xlane.f32.xlu0 %v2508_v28 }
0x198d   :  { %v2230_v34 = vpop.xlane.xlu1 %2229 }
0x198e   :  { %v2231_v35 = vsub.f32 %v2224_v6, %v2230_v34 }
0x1990   :  { %v2232_v33 = vmul.f32 1.442695, %v2231_v35 }
0x1992   :  { %3101 = vpow2.f32 %v2232_v33 }
0x199c   :  { %v3102_v36 = vpop.eup %3101 }
0x199d   :  { %v2234_v37 = vsel %vm252_vm7, %v3102_v36, 0.0 }
0x199e   :  { %2235 = vadd.xlane.f32.xlu0 %v2234_v37 }
0x19de   :  { %v2371_v38 = vpop.xlane.xlu0 %2370 }
0x19df   :  { %3103 = vrcp.f32 %v2371_v38 }
0x19e2   :  { %v2510_v39 = vpop.xlane.xlu0 %2509 }
0x19e3   :  { %3105 = vrcp.f32 %v2510_v39 }
0x19e9   :  { %v3104_v40 = vpop.eup %3103 }
0x19ea   :  { %v2373_v41 = vmul.f32 %v3104_v40, %v3100_v18 }
0x19ec   :  { %v2374_v19 = vpack.c.bf16 %v2373_v41, %v2373_v41 }
0x19ed   :  { %v3106_v4 = vpop.eup %3105 }
0x19ee   :  { %v2512_v42 = vmul.f32 %v3106_v4, %v3098_v17  ;;  %v2382_v44 = vrot.slane %v2374_v19, %v3310_v7 }
0x19f0   :  { %v2513_v45 = vpack.c.bf16 %v2512_v42, %v2512_v42  ;;  %v2389_v47 = vrot.slane %v2382_v44, %v3310_v7 }
0x19f2   :  { %v2740_v48 = vpack.i.b16 %v2389_v47, %v2389_v47  ;;  %v2391_v11 = vunpack.i.h.s16 %v2389_v47  ;;  %v2521_v49 = vrot.slane %v2513_v45, %v3310_v7 }
0x19f4   :  { %v2396_v50 = vrot.slane %v2740_v48, %v3316_v25  ;;  %v2442_v51 = vpack.i.b16 %v2391_v11, %v2391_v11  ;;  %v2528_v52 = vrot.slane %v2521_v49, %v3310_v7 }
0x19f6   :  { %2397 = vrot.lane.b32.xlu0 %v2396_v50, %s3176_s5  ;;  %v2446_v54 = vrot.slane %v2442_v51, %v3316_v25  ;;  %v2530_v13 = vunpack.i.h.s16 %v2528_v52  ;;  %v2743_v57 = vpack.i.b16 %v2528_v52, %v2528_v52 }
0x19f8   :  { %2447 = vrot.lane.b32.xlu1 %v2446_v54, %s3176_s5  ;;  %v2581_v14 = vpack.i.b16 %v2530_v13, %v2530_v13  ;;  %v2535_v58 = vrot.slane %v2743_v57, %v3316_v25 }
0x19fa   :  { %714 = vrot.lane.b32.xlu0 %v3401_v60, %s3180_s19  ;;  %v2585_v63 = vrot.slane %v2581_v14, %v3316_v25 }
0x19fc   :  { %2586 = vrot.lane.b32.xlu1 %v2585_v63, %s3177_s15 }
0x19fe   :  { %1688 = vrot.lane.b32.xlu0 %v3561_v46, %s3180_s19 }
0x1a00   :  { %2536 = vrot.lane.b32.xlu1 %v2535_v58, %s3177_s15 }
0x1a2b   :  { %v2236_v62 = vpop.xlane.xlu0 %2235 }
0x1a2c   :  { %3107 = vrcp.f32 %v2236_v62 }
0x1a36   :  { %v3108_v0 = vpop.eup %3107 }
0x1a37   :  { %v2238_v1 = vmul.f32 %v3108_v0, %v3102_v36 }
0x1a39   :  { %v2239_v2 = vpack.c.bf16 %v2238_v1, %v2238_v1 }
0x1a3b   :  { %v2247_v5 = vrot.slane %v2239_v2, %v3310_v7 }
0x1a3d   :  { %v2254_v60 = vrot.slane %v2247_v5, %v3310_v7 }
0x1a3f   :  { %v2737_v6 = vpack.i.b16 %v2254_v60, %v2254_v60  ;;  %v2256_v8 = vunpack.i.h.s16 %v2254_v60 }
0x1a41   :  { %v2261_v9 = vrot.slane %v2737_v6, %v3316_v25  ;;  %v2305_v10 = vpack.i.b16 %v2256_v8, %v2256_v8 }
0x1a43   :  { %2962 = vmatmul.mubr.msk.bf16.vlgmr.msra.gmra.mrb[60].mxu1 %vm287_vm8, %v2261_v9  ;;  %v2309_v46 = vrot.slane %v2305_v10, %v3316_v25 }
0x1a44   :  { %2972 = vmatpush3.bf16.msra.mxu1 %v3333_v24  ;;  %2973 = vmatprep.mubr.msk.bf16.mxu1 %vm3175_vm3, %v3174_v20 }
0x1a45   :  { %2968 = vmatmul.mubr.msk.bf16.vlgmr.msra.gmra.mrb[64].mxu0 %vm287_vm8, %v2309_v46  ;;  %2983 = vmatprep.subr.bf16.mxu1 %v3174_v20 }
0x1a46   :  { %2978 = vmatpush3.bf16.msra.mxu0 %v3342_v29  ;;  %2979 = vmatprep.mubr.msk.bf16.mxu0 %vm3175_vm3, %v3174_v20 }
0x1a47   :  { %2989 = vmatprep.subr.bf16.mxu0 %v3174_v20 }
0x1a68   :  { %v2398_v7 = vpop.permute.xlu0 %2397 }
0x1a69   :  { %2974 = vmatmul.mubr.msk.bf16.vlgmr.msra.gmra.mrb[64].mxu1 %vm287_vm8, %v2398_v7 }
0x1a6a   :  { %2984 = vmatpush3.bf16.msra.mxu1 %v3363_v55  ;;  %v2448_v25 = vpop.permute.xlu1 %2447  ;;  %2985 = vmatprep.mubr.msk.bf16.mxu1 %vm3175_vm3, %v3174_v20 }
0x1a6b   :  { %2980 = vmatmul.mubr.msk.bf16.vlgmr.msra.gmra.mrb[68].mxu0 %vm287_vm8, %v2448_v25 }
0x1a6c   :  { %2990 = vmatpush3.bf16.msra.mxu0 %v3356_v53  ;;  %v715_v24 = vpop.permute.xlu0 %714  ;;  %2991 = vmatprep.mubr.msk.bf16.mxu0 %vm3175_vm3, %v3174_v20  ;;  %v2222_v20 = vadd.f32 %v3647_v43, %v3384_v59 }
0x1a6d   :  { %718 = vst.msk [vmem:[#allocation5] sm:$0x3] %vm717_vm10, %v715_v24 }
0x1a6e   :  { %v2587_v29 = vpop.permute.xlu1 %2586 }
0x1a70   :  { %v1689_v27 = vpop.permute.xlu0 %1688 }
0x1a71   :  { %1692 = vst.msk [vmem:[#allocation5 + $0x4] sm:$0x3] %vm717_vm10, %v1689_v27 }
0x1a72   :  { %v2537_v55 = vpop.permute.xlu1 %2536 }
0x1a73   :  { %2986 = vmatmul.mubr.msk.bf16.vlgmr.msra.gmra.mrb[68].mxu1 %vm287_vm8, %v2537_v55  ;;  %2992 = vmatmul.mubr.msk.bf16.vlgmr.msra.gmra.mrb[72].mxu0 %vm287_vm8, %v2587_v29 }
0x1b16   :  { %v2299_v12 = vpop.f32.mrb[60].mxu1 }
0x1b17   :  { %v2963_v31 = vpop.f32.mrb[61].mxu1 }
0x1b18   :  { %v2302_v16 = vpop.f32.mrb[62].mxu1  ;;  %v2347_v30 = vpop.f32.mrb[64].mxu0 }
0x1b19   :  { %v2355_v53 = vrot.slane %v2347_v30, 7  ;;  %v2964_v3 = vpop.f32.mrb[63].mxu1  ;;  %v2969_v56 = vpop.f32.mrb[65].mxu0 }
0x1b1a   :  { %v2350_v17 = vpop.f32.mrb[66].mxu0 }
0x1b1b   :  { %v2356_v18 = vsel %vm389_vm9, %v2355_v53, %v2299_v12  ;;  %v2970_v32 = vpop.f32.mrb[67].mxu0 }
0x1b1c   :  { %v2358_v21 = vadd.f32 %v2356_v18, %v2222_v20 }
0x1b3c   :  { %v2436_v22 = vpop.f32.mrb[64].mxu1 }
0x1b3d   :  { %v2975_v26 = vpop.f32.mrb[65].mxu1 }
0x1b3e   :  { %v2439_v28 = vpop.f32.mrb[66].mxu1  ;;  %v2486_v34 = vpop.f32.mrb[68].mxu0 }
0x1b3f   :  { %v2494_v35 = vrot.slane %v2486_v34, 7  ;;  %v2976_v33 = vpop.f32.mrb[67].mxu1  ;;  %v2981_v36 = vpop.f32.mrb[69].mxu0 }
0x1b40   :  { %v2489_v37 = vpop.f32.mrb[70].mxu0 }
0x1b41   :  { %v2495_v38 = vsel %vm389_vm9, %v2494_v35, %v2436_v22  ;;  %v2982_v39 = vpop.f32.mrb[71].mxu0 }
0x1b42   :  { %v2497_v40 = vadd.f32 %v2495_v38, %v2358_v21 }
0x1b46   :  { %v2575_v41 = vpop.f32.mrb[68].mxu1  ;;  %v2625_v19 = vpop.f32.mrb[72].mxu0 }
0x1b47   :  { %v2633_v59 = vrot.slane %v2625_v19, 7  ;;  %v2987_v43 = vpop.f32.mrb[69].mxu1  ;;  %v2993_v4 = vpop.f32.mrb[73].mxu0 }
0x1b48   :  { %v2578_v42 = vpop.f32.mrb[70].mxu1  ;;  %v2628_v44 = vpop.f32.mrb[74].mxu0 }
0x1b49   :  { %v2634_v45 = vsel %vm389_vm9, %v2633_v59, %v2575_v41  ;;  %v2988_v47 = vpop.f32.mrb[71].mxu1  ;;  %v2994_v48 = vpop.f32.mrb[75].mxu0 }
0x1b4a   :  { %v2636_v11 = vadd.f32 %v2634_v45, %v2497_v40 }
0x1b4c   :  { %3109 = vtanh.f32 %v2636_v11  ;;  %v2746_v50 = vmul.f32 -1.442695, %v2636_v11 }
0x1b4e   :  { %3111 = vpow2.f32 %v2746_v50 }
0x1b56   :  { %v3110_v49 = vpop.eup %3109 }
0x1b57   :  { %2646 = vrot.lane.b32.xlu1 %v3110_v49, %s3179_s16 }
0x1b58   :  { %v3112_v51 = vpop.eup %3111 }
0x1b59   :  { %v2640_v52 = vadd.f32 1.0, %v3112_v51 }
0x1b5b   :  { %1201 = vrot.lane.b32.xlu1 %v3481_v23, %s3180_s19  ;;  %3113 = vrcp.f32 %v2640_v52 }
0x1b5f   :  { %2175 = vrot.lane.b32.xlu1 %v3637_v15, %s3180_s19 }
0x1b65   :  { %v3114_v54 = vpop.eup %3113 }
0x1b66   :  { %v2644_v23 = vmul.f32 %v3114_v54, %v3633_v61 }
0x1bc9   :  { %v2647_v13 = vpop.permute.xlu1 %2646 }
0x1bca   :  { %v2649_v14 = vmul.f32 %v3114_v54, %v2647_v13 }
0x1bcc   :  { %2651 = vrot.lane.b32.xlu0 %v2649_v14, %s3180_s19 }
0x1bcd   :  { %v1202_v63 = vpop.permute.xlu1 %1201 }
0x1bce   :  { %1205 = vst.msk [vmem:[#allocation5 + $0x2] sm:$0x3] %vm717_vm10, %v1202_v63 }
0x1bd1   :  { %v2176_v57 = vpop.permute.xlu1 %2175 }
0x1bd2   :  { %2179 = vst.msk [vmem:[#allocation5 + $0x6] sm:$0x3] %vm717_vm10, %v2176_v57 }
0x1c3e   :  { %v2652_v58 = vpop.permute.xlu0 %2651 }
0x1c3f   :  { %v2654_v15 = vadd.f32 %v2652_v58, %v2644_v23 }
0x1c41   :  { %3115 = vtanh.f32 %v2654_v15 }
0x1c4b   :  { %v3116_v62 = vpop.eup %3115 }
0x1c4c   :  { %2657 = vrot.lane.b32.xlu1 %v3116_v62, %s3179_s16 }
0x1cbe   :  { %v2658_v0 = vpop.permute.xlu1 %2657 }
0x1cbf   :  { %v2660_v1 = vmul.f32 %v3114_v54, %v2658_v0 }
0x1cc1   :  { %2662 = vrot.lane.b32.xlu0 %v2660_v1, %s3180_s19 }
0x1d33   :  { %v2663_v2 = vpop.permute.xlu0 %2662 }
0x1d34   :  { %2666 = vst.msk [vmem:[#allocation5 + $0x8] sm:$0x3] %vm717_vm10, %v2663_v2 }
0x1d35   :  { %3154 = shalt.err (!%p3151_p12)
}
0x1d36   :  { %s3155_s24 = scalar_lea.hbm %s3737_s6, 160 }
0x1d37   :  { %p3156_p13 = scmp.ne.s32.totalorder %s3737_s6, %s3155_s24  ;;  %p3159_p0 = scmp.lt.u32.totalorder %s3155_s24, %s3737_s6 }
0x1d39   :  { %p3161_p1 = pnand %p3159_p0, %p3156_p13 }
0x1d3b   :  { %3164 = shalt.err (!%p3161_p1)
}
0x1d3c   :  { %s3182_s29 = smov 2  }
0x1d3d   :  { %2678 = dma.vmem_to_hbm [thread:$0]  %s2673_s20, 160, %s3737_s6, [#allocation4], %s3180_s19, %s3180_s19, %s3182_s29  }
0x1d3e   :  { %3167 = dma.done.wait [#allocation4], 160  }
0x1d3f   :  { %3168 = vsyncadd [#allocation4], 4294967136 }
0x1d40   :  { %2682 = vsyncpa [#allocation3], 1 }
0x1d41   :  { %2683 = vsyncpa [#allocation4], 1 }

</bundles_post_ra>
